<compile_context>
chip_gen: v5e
topology: v5e:2x2
jax: 0.10.0
libtpu: 0.0.40
codegen_flags: <defaults>
</compile_context>

<pallas_src>
import jax
import jax.numpy as jnp
from jax.experimental import pallas as pl
from jax.experimental.pallas import tpu as pltpu

STOCHASTIC_SIZE = 30       # args.stochastic_size
ACTION_SIZE = 6            # dm_control walker-walk action dim
DETERMINISTIC_SIZE = 200   # args.deterministic_size
HIDDEN = 200               # Linear output / GRU input size

# Lane-aligned padded widths for the fused gate layout.
H_PAD = 256                # padded linear-output / GRU-input width
D_PAD = 256                # padded per-gate output width (3 gates -> 768 lanes)


def _recurrent_kernel(
    state_ref,    # (B, S)            f32
    action_ref,   # (B, A)            f32
    h_ref,        # (B, D)            f32  previous deterministic state
    wls_ref,      # (S, H_PAD)        bf16 linear weight, state rows (padded cols)
    wla_ref,      # (A, H_PAD)        bf16 linear weight, action rows (padded cols)
    wih_ref,      # (H_PAD, 3*D_PAD)  bf16 fused input->gate weights  [r|z|n]
    whh_ref,      # (D, 3*D_PAD)      bf16 fused hidden->gate weights [r|z|n]
    b_ref,        # (8, D_PAD)        f32  rows: [bl, br, bz, b_in, b_hn, 0, 0, 0]
    out_ref,      # (B, D)            f32
):
    state = state_ref[...]
    action = action_ref[...]
    h = h_ref[...]
    b = b_ref[...]
    bl, br, bz, b_in, b_hn = b[0:1], b[1:2], b[2:3], b[3:4], b[4:5]

    # bf16 storage -> f32 compute (accumulation + elementwise math stay f32).
    wls = wls_ref[...].astype(jnp.float32)
    wla = wla_ref[...].astype(jnp.float32)
    wih = wih_ref[...].astype(jnp.float32)
    whh = whh_ref[...].astype(jnp.float32)

    # Linear(S+A -> 200, cols padded to 256) + ELU(alpha=1).  The torch.cat is
    # fused away by splitting the weight into state / action row blocks.
    pre = (jnp.dot(state, wls, preferred_element_type=jnp.float32)
           + jnp.dot(action, wla, preferred_element_type=jnp.float32)
           + bl)
    # min() guards the (discarded) positive branch so exp never overflows.
    e = jnp.where(pre > 0.0, pre, jnp.exp(jnp.minimum(pre, 0.0)) - 1.0)

    # Fused GRU gate matmuls: 2 MXU ops instead of 6.
    gi = jnp.dot(e, wih, preferred_element_type=jnp.float32)   # (B, 3*D_PAD)
    gh = jnp.dot(h, whh, preferred_element_type=jnp.float32)   # (B, 3*D_PAD)

    # 128-lane-aligned gate slices (each gate block is D_PAD = 256 wide).
    r = jax.nn.sigmoid(gi[:, 0 * D_PAD:1 * D_PAD] + gh[:, 0 * D_PAD:1 * D_PAD] + br)
    z = jax.nn.sigmoid(gi[:, 1 * D_PAD:2 * D_PAD] + gh[:, 1 * D_PAD:2 * D_PAD] + bz)
    n = jnp.tanh(gi[:, 2 * D_PAD:3 * D_PAD] + b_in
                 + r * (gh[:, 2 * D_PAD:3 * D_PAD] + b_hn))

    D = out_ref.shape[1]
    out_ref[...] = (1.0 - z[:, :D]) * n[:, :D] + z[:, :D] * h


def prepare_params(params, weight_dtype=jnp.bfloat16):
    """One-time weight preprocessing (transpose / fuse / pad / bf16 cast).

    Call once at init; the per-step path passes the returned arrays straight
    to the kernel with no further transposes, slices, or bias adds.
    """
    S, A = STOCHASTIC_SIZE, ACTION_SIZE
    D, H = DETERMINISTIC_SIZE, HIDDEN
    f32 = jnp.float32

    lin_w = params["lin_w"]            # (H, S+A)  torch layout (out, in)
    lin_b = params["lin_b"]            # (H,)
    w_ih = params["gru_w_ih"]          # (3D, H)   gate order r, z, n
    w_hh = params["gru_w_hh"]          # (3D, D)
    b_ih = params["gru_b_ih"]          # (3D,)
    b_hh = params["gru_b_hh"]          # (3D,)

    wl_t = lin_w.T.astype(f32)         # (S+A, H)
    wl_s = jnp.zeros((S, H_PAD), f32).at[:, :H].set(wl_t[:S])
    wl_a = jnp.zeros((A, H_PAD), f32).at[:, :H].set(wl_t[S:])

    # Fused + padded gate weights: gate g occupies columns [g*256, g*256+200).
    w_ih_f = jnp.zeros((H_PAD, 3 * D_PAD), f32)
    w_hh_f = jnp.zeros((D, 3 * D_PAD), f32)
    for g in range(3):                 # r, z, n
        w_ih_f = w_ih_f.at[:H, g * D_PAD:g * D_PAD + D].set(w_ih[g * D:(g + 1) * D].T)
        w_hh_f = w_hh_f.at[:, g * D_PAD:g * D_PAD + D].set(w_hh[g * D:(g + 1) * D].T)

    # Packed bias slab (stays f32): rows = [bl, br, bz, b_in, b_hn, 0, 0, 0].
    biases = jnp.zeros((8, D_PAD), f32)
    biases = biases.at[0, :H].set(lin_b)
    biases = biases.at[1, :D].set(b_ih[0 * D:1 * D] + b_hh[0 * D:1 * D])   # r (combined)
    biases = biases.at[2, :D].set(b_ih[1 * D:2 * D] + b_hh[1 * D:2 * D])   # z (combined)
    biases = biases.at[3, :D].set(b_ih[2 * D:3 * D])                       # n, input bias
    biases = biases.at[4, :D].set(b_hh[2 * D:3 * D])                       # n, hidden bias

    return {
        "wl_s": wl_s.astype(weight_dtype),
        "wl_a": wl_a.astype(weight_dtype),
        "w_ih": w_ih_f.astype(weight_dtype),
        "w_hh": w_hh_f.astype(weight_dtype),
        "biases": biases,
    }


def recurrent_model_forward(state, action, deterministic, prep):
    """state: (B, 30), action: (B, 6), deterministic: (B, 200) -> (B, 200).

    Shapes are tiny: single invocation, every operand is one full-array VMEM
    block (no grid).  If this step is called inside a multi-step rollout/scan,
    the next-level win is moving the time loop into the kernel (grid=(T,),
    weight index_map lambda t: (0, 0), h carried in VMEM scratch) so the
    ~0.5 MB of weights stays VMEM-resident across steps.
    """
    B = state.shape[0]
    vmem = pl.BlockSpec(memory_space=pltpu.MemorySpace.VMEM)
    return pl.pallas_call(
        _recurrent_kernel,
        out_shape=jax.ShapeDtypeStruct((B, DETERMINISTIC_SIZE), jnp.float32),
        in_specs=[vmem] * 8,
        out_specs=vmem,
    )(state, action, deterministic,
      prep["wl_s"], prep["wl_a"], prep["w_ih"], prep["w_hh"], prep["biases"])


def _init_params(key):
    """Deterministic init mirroring the PyTorch layer shapes (uniform +/- 1/sqrt(fan_in))."""
    in_dim = STOCHASTIC_SIZE + ACTION_SIZE
    D, H = DETERMINISTIC_SIZE, HIDDEN
    ks = jax.random.split(key, 6)

    def u(k, shape, fan_in):
        bound = 1.0 / jnp.sqrt(fan_in)
        return jax.random.uniform(k, shape, jnp.float32, -bound, bound)

    return {
        "lin_w": u(ks[0], (H, in_dim), in_dim),     # nn.Linear(36, 200).weight
        "lin_b": u(ks[1], (H,), in_dim),            # nn.Linear.bias
        "gru_w_ih": u(ks[2], (3 * D, H), D),        # GRUCell.weight_ih
        "gru_w_hh": u(ks[3], (3 * D, D), D),        # GRUCell.weight_hh
        "gru_b_ih": u(ks[4], (3 * D,), D),          # GRUCell.bias_ih
        "gru_b_hh": u(ks[5], (3 * D,), D),          # GRUCell.bias_hh
    }


def _reference_forward(state, action, deterministic, params, weight_dtype=jnp.bfloat16):
    """Pure-JAX reference of the PyTorch semantics, using the same bf16-stored
    weight values the kernel consumes (biases stay f32), so kernel vs reference
    is an apples-to-apples f32-math comparison."""
    rw = lambda w: w.astype(weight_dtype).astype(jnp.float32)
    x = jnp.concatenate([state, action], axis=1)
    pre = x @ rw(params["lin_w"]).T + params["lin_b"]
    e = jnp.where(pre > 0.0, pre, jnp.exp(jnp.minimum(pre, 0.0)) - 1.0)
    D = DETERMINISTIC_SIZE
    gi = e @ rw(params["gru_w_ih"]).T + params["gru_b_ih"]
    gh = deterministic @ rw(params["gru_w_hh"]).T + params["gru_b_hh"]
    r = jax.nn.sigmoid(gi[:, :D] + gh[:, :D])
    z = jax.nn.sigmoid(gi[:, D:2 * D] + gh[:, D:2 * D])
    n = jnp.tanh(gi[:, 2 * D:] + r * gh[:, 2 * D:])
    return (1.0 - z) * n + z * deterministic


if __name__ == "__main__":
    key = jax.random.PRNGKey(0)
    k_p, k_s, k_a, k_h = jax.random.split(key, 4)

    B = 2
    params = _init_params(k_p)
    prep = prepare_params(params)        # one-time; NOT on the per-step path

    state = jax.random.normal(k_s, (B, STOCHASTIC_SIZE), jnp.float32)
    action = jax.random.normal(k_a, (B, ACTION_SIZE), jnp.float32)
    deterministic = jax.random.normal(k_h, (B, DETERMINISTIC_SIZE), jnp.float32)

    fwd = jax.jit(recurrent_model_forward)
    out = jax.block_until_ready(fwd(state, action, deterministic, prep))

    ref = _reference_forward(state, action, deterministic, params)
    assert out.shape == (B, DETERMINISTIC_SIZE)
    assert jnp.allclose(out, ref, atol=2e-5, rtol=2e-5), float(jnp.max(jnp.abs(out - ref)))

    print("KERNEL_OK")
</pallas_src>

<mosaic_0001>
module attributes {stable_mosaic.version = 11 : i64} {
  func.func @_recurrent_kernel(%arg0: memref<2x30xf32, #tpu.memory_space<vmem>>, %arg1: memref<2x6xf32, #tpu.memory_space<vmem>>, %arg2: memref<2x200xf32, #tpu.memory_space<vmem>>, %arg3: memref<30x256xbf16, #tpu.memory_space<vmem>>, %arg4: memref<6x256xbf16, #tpu.memory_space<vmem>>, %arg5: memref<256x768xbf16, #tpu.memory_space<vmem>>, %arg6: memref<200x768xbf16, #tpu.memory_space<vmem>>, %arg7: memref<8x256xf32, #tpu.memory_space<vmem>>, %arg8: memref<2x200xf32, #tpu.memory_space<vmem>>) attributes {dimension_semantics = [], scalar_prefetch = 0 : i64, scratch_operands = 0 : i64, tpu.core_type = #tpu.core_type<tc>} {
    %c0 = arith.constant 0 : index
    %c0_0 = arith.constant 0 : index
    %0 = vector.load %arg0[%c0, %c0_0] : memref<2x30xf32, #tpu.memory_space<vmem>>, vector<2x30xf32>
    %c0_1 = arith.constant 0 : index
    %c0_2 = arith.constant 0 : index
    %1 = vector.load %arg1[%c0_1, %c0_2] : memref<2x6xf32, #tpu.memory_space<vmem>>, vector<2x6xf32>
    %c0_3 = arith.constant 0 : index
    %c0_4 = arith.constant 0 : index
    %2 = vector.load %arg2[%c0_3, %c0_4] : memref<2x200xf32, #tpu.memory_space<vmem>>, vector<2x200xf32>
    %c0_5 = arith.constant 0 : index
    %c0_6 = arith.constant 0 : index
    %3 = vector.load %arg7[%c0_5, %c0_6] : memref<8x256xf32, #tpu.memory_space<vmem>>, vector<8x256xf32>
    %4 = vector.extract_strided_slice %3 {offsets = [0, 0], sizes = [1, 256], strides = [1, 1]} : vector<8x256xf32> to vector<1x256xf32>
    %5 = vector.extract_strided_slice %3 {offsets = [1, 0], sizes = [1, 256], strides = [1, 1]} : vector<8x256xf32> to vector<1x256xf32>
    %6 = vector.extract_strided_slice %3 {offsets = [2, 0], sizes = [1, 256], strides = [1, 1]} : vector<8x256xf32> to vector<1x256xf32>
    %7 = vector.extract_strided_slice %3 {offsets = [3, 0], sizes = [1, 256], strides = [1, 1]} : vector<8x256xf32> to vector<1x256xf32>
    %8 = vector.extract_strided_slice %3 {offsets = [4, 0], sizes = [1, 256], strides = [1, 1]} : vector<8x256xf32> to vector<1x256xf32>
    %c0_7 = arith.constant 0 : index
    %c0_8 = arith.constant 0 : index
    %9 = vector.load %arg3[%c0_7, %c0_8] : memref<30x256xbf16, #tpu.memory_space<vmem>>, vector<30x256xbf16>
    %10 = arith.extf %9 : vector<30x256xbf16> to vector<30x256xf32>
    %c0_9 = arith.constant 0 : index
    %c0_10 = arith.constant 0 : index
    %11 = vector.load %arg4[%c0_9, %c0_10] : memref<6x256xbf16, #tpu.memory_space<vmem>>, vector<6x256xbf16>
    %12 = arith.extf %11 : vector<6x256xbf16> to vector<6x256xf32>
    %c0_11 = arith.constant 0 : index
    %c0_12 = arith.constant 0 : index
    %13 = vector.load %arg5[%c0_11, %c0_12] : memref<256x768xbf16, #tpu.memory_space<vmem>>, vector<256x768xbf16>
    %14 = arith.extf %13 : vector<256x768xbf16> to vector<256x768xf32>
    %c0_13 = arith.constant 0 : index
    %c0_14 = arith.constant 0 : index
    %15 = vector.load %arg6[%c0_13, %c0_14] : memref<200x768xbf16, #tpu.memory_space<vmem>>, vector<200x768xbf16>
    %16 = arith.extf %15 : vector<200x768xbf16> to vector<200x768xf32>
    %cst = arith.constant dense<0.000000e+00> : vector<2x256xf32>
    %17 = tpu.matmul %0, %10, %cst {dimension_numbers = #tpu.dot_dimension_numbers<[1], [0], [0], [1], [0, 0, 1, 1], [], []>} : vector<2x30xf32>, vector<30x256xf32>, vector<2x256xf32> -> vector<2x256xf32>
    %cst_15 = arith.constant dense<0.000000e+00> : vector<2x256xf32>
    %18 = tpu.matmul %1, %12, %cst_15 {dimension_numbers = #tpu.dot_dimension_numbers<[1], [0], [0], [1], [0, 0, 1, 1], [], []>} : vector<2x6xf32>, vector<6x256xf32>, vector<2x256xf32> -> vector<2x256xf32>
    %19 = arith.addf %17, %18 : vector<2x256xf32>
    %20 = vector.broadcast %4 : vector<1x256xf32> to vector<2x256xf32>
    %21 = arith.addf %19, %20 : vector<2x256xf32>
    %cst_16 = arith.constant 0.000000e+00 : f32
    %22 = vector.broadcast %cst_16 : f32 to vector<2x256xf32>
    %23 = arith.cmpf ogt, %21, %22 : vector<2x256xf32>
    %cst_17 = arith.constant 0.000000e+00 : f32
    %24 = vector.broadcast %cst_17 : f32 to vector<2x256xf32>
    %25 = arith.minimumf %21, %24 : vector<2x256xf32>
    %26 = math.exp %25 : vector<2x256xf32>
    %cst_18 = arith.constant 1.000000e+00 : f32
    %27 = vector.broadcast %cst_18 : f32 to vector<2x256xf32>
    %28 = arith.subf %26, %27 : vector<2x256xf32>
    %29 = arith.select %23, %21, %28 : vector<2x256xi1>, vector<2x256xf32>
    %cst_19 = arith.constant dense<0.000000e+00> : vector<2x768xf32>
    %30 = tpu.matmul %29, %14, %cst_19 {dimension_numbers = #tpu.dot_dimension_numbers<[1], [0], [0], [1], [0, 0, 1, 1], [], []>} : vector<2x256xf32>, vector<256x768xf32>, vector<2x768xf32> -> vector<2x768xf32>
    %cst_20 = arith.constant dense<0.000000e+00> : vector<2x768xf32>
    %31 = tpu.matmul %2, %16, %cst_20 {dimension_numbers = #tpu.dot_dimension_numbers<[1], [0], [0], [1], [0, 0, 1, 1], [], []>} : vector<2x200xf32>, vector<200x768xf32>, vector<2x768xf32> -> vector<2x768xf32>
    %32 = vector.extract_strided_slice %30 {offsets = [0, 0], sizes = [2, 256], strides = [1, 1]} : vector<2x768xf32> to vector<2x256xf32>
    %33 = vector.extract_strided_slice %31 {offsets = [0, 0], sizes = [2, 256], strides = [1, 1]} : vector<2x768xf32> to vector<2x256xf32>
    %34 = arith.addf %32, %33 : vector<2x256xf32>
    %35 = vector.broadcast %5 : vector<1x256xf32> to vector<2x256xf32>
    %36 = arith.addf %34, %35 : vector<2x256xf32>
    %37 = arith.negf %36 : vector<2x256xf32>
    %38 = math.exp %37 : vector<2x256xf32>
    %cst_21 = arith.constant 1.000000e+00 : f32
    %39 = vector.broadcast %cst_21 : f32 to vector<2x256xf32>
    %40 = arith.addf %39, %38 : vector<2x256xf32>
    %41 = arith.divf %39, %40 : vector<2x256xf32>
    %42 = vector.extract_strided_slice %30 {offsets = [0, 256], sizes = [2, 256], strides = [1, 1]} : vector<2x768xf32> to vector<2x256xf32>
    %43 = vector.extract_strided_slice %31 {offsets = [0, 256], sizes = [2, 256], strides = [1, 1]} : vector<2x768xf32> to vector<2x256xf32>
    %44 = arith.addf %42, %43 : vector<2x256xf32>
    %45 = vector.broadcast %6 : vector<1x256xf32> to vector<2x256xf32>
    %46 = arith.addf %44, %45 : vector<2x256xf32>
    %47 = arith.negf %46 : vector<2x256xf32>
    %48 = math.exp %47 : vector<2x256xf32>
    %cst_22 = arith.constant 1.000000e+00 : f32
    %49 = vector.broadcast %cst_22 : f32 to vector<2x256xf32>
    %50 = arith.addf %49, %48 : vector<2x256xf32>
    %51 = arith.divf %49, %50 : vector<2x256xf32>
    %52 = vector.extract_strided_slice %30 {offsets = [0, 512], sizes = [2, 256], strides = [1, 1]} : vector<2x768xf32> to vector<2x256xf32>
    %53 = vector.broadcast %7 : vector<1x256xf32> to vector<2x256xf32>
    %54 = arith.addf %52, %53 : vector<2x256xf32>
    %55 = vector.extract_strided_slice %31 {offsets = [0, 512], sizes = [2, 256], strides = [1, 1]} : vector<2x768xf32> to vector<2x256xf32>
    %56 = vector.broadcast %8 : vector<1x256xf32> to vector<2x256xf32>
    %57 = arith.addf %55, %56 : vector<2x256xf32>
    %58 = arith.mulf %41, %57 : vector<2x256xf32>
    %59 = arith.addf %54, %58 : vector<2x256xf32>
    %60 = math.tanh %59 : vector<2x256xf32>
    %61 = vector.extract_strided_slice %51 {offsets = [0, 0], sizes = [2, 200], strides = [1, 1]} : vector<2x256xf32> to vector<2x200xf32>
    %cst_23 = arith.constant 1.000000e+00 : f32
    %62 = vector.broadcast %cst_23 : f32 to vector<2x200xf32>
    %63 = arith.subf %62, %61 : vector<2x200xf32>
    %64 = vector.extract_strided_slice %60 {offsets = [0, 0], sizes = [2, 200], strides = [1, 1]} : vector<2x256xf32> to vector<2x200xf32>
    %65 = arith.mulf %63, %64 : vector<2x200xf32>
    %66 = vector.extract_strided_slice %51 {offsets = [0, 0], sizes = [2, 200], strides = [1, 1]} : vector<2x256xf32> to vector<2x200xf32>
    %67 = arith.mulf %66, %2 : vector<2x200xf32>
    %68 = arith.addf %65, %67 : vector<2x200xf32>
    %c0_24 = arith.constant 0 : index
    %c0_25 = arith.constant 0 : index
    %69 = vector.load %arg8[%c0_24, %c0_25] : memref<2x200xf32, #tpu.memory_space<vmem>>, vector<2x200xf32>
    tpu.vector_store %arg8[%c0_24, %c0_25], %68 {strides = array<i32>} : memref<2x200xf32, #tpu.memory_space<vmem>>, vector<2x200xf32>,
    return
  }
}

</mosaic_0001>

<bundles_post_ra>
// kernel: recurrent_model_forward.1
= control target key start
LH: loop header
LB: loop body
LE: loop exit
PB: predicated region body
PF: predicated region fallthrough
CT: control target
= control target key end

     0   :  { %13 = vsyncpa [#allocation3], 0  ;;  %s2059_s0 = inlined_call_operand.hbm [shape: f32[2,30], index: 0, kind: input, shape index: {}]   ;;  %s2060_s1 = inlined_call_operand.hbm [shape: f32[2,6], index: 1, kind: input, shape index: {}]   ;;  %s2061_s2 = inlined_call_operand.hbm [shape: f32[2,200], index: 2, kind: input, shape index: {}]   ;;  %s2062_s3 = inlined_call_operand.hbm [shape: bf16[30,256], index: 3, kind: input, shape index: {}]   ;;  %s2063_s4 = inlined_call_operand.hbm [shape: bf16[6,256], index: 4, kind: input, shape index: {}]   ;;  %s2064_s5 = inlined_call_operand.hbm [shape: bf16[256,768], index: 5, kind: input, shape index: {}]   ;;  %s2065_s6 = inlined_call_operand.hbm [shape: bf16[200,768], index: 6, kind: input, shape index: {}]   ;;  %s2066_s7 = inlined_call_operand.hbm [shape: f32[8,256], index: 7, kind: input, shape index: {}]   ;;  %s2067_s8 = inlined_call_operand.hbm [shape: f32[2,200], index: 8, kind: output, shape index: {}]  }
   0x1   :  { %14 = vsyncpa [#allocation6], 0 }
   0x2   :  { %15 = vsyncpa [#allocation9], 0 }
   0x3   :  { %16 = vsyncpa [#allocation12], 0 }
   0x4   :  { %17 = vsyncpa [#allocation15], 0  ;;  %s35_s29 = sshll.u32 %s2060_s1, 4  ;;  %s36_s29 = int_to_ptr.hbm [resolvable:$true] %s35_s29 }
   0x5   :  { %18 = vsyncpa [#allocation4], 0  ;;  %s1715_s30 = smov [#allocation5]   ;;  %s56_s12 = sshll.u32 %s2062_s3, 4  ;;  %s57_s12 = int_to_ptr.hbm [resolvable:$true] %s56_s12 }
   0x6   :  { %s37_s9 = sshll.u32 %s1715_s30, 4  ;;  %s1716_s13 = smov [#allocation8]   ;;  %s38_s9 = int_to_ptr.vmem [resolvable:$true] %s37_s9 }
   0x7   :  { %40 = dma.hbm_to_vmem [thread:$0]  %s36_s29, 32, %s38_s9, [#allocation6]  }
   0x8   :  { %s58_s14 = sshll.u32 %s1716_s13, 4  ;;  %s1717_s15 = smov 128   ;;  %s59_s14 = int_to_ptr.vmem [resolvable:$true] %s58_s14 }
   0x9   :  { %s1718_s16 = smov 8   ;;  %s80_s1 = sshll.u32 %s2064_s5, 4  ;;  %s81_s1 = int_to_ptr.hbm [resolvable:$true] %s80_s1 }
   0xa   :  { %64 = dma.hbm_to_vmem [thread:$0]  %s57_s12, 512, %s59_s14, [#allocation9], %s1717_s15, %s1717_s15, %s1718_s16  }
   0xb   :  { %s1719_s19 = smov [#allocation11]   ;;  %s24_s3 = sshll.u32 %s2059_s0, 4  ;;  %s25_s3 = int_to_ptr.hbm [resolvable:$true] %s24_s3 }
   0xc   :  { %s82_s20 = sshll.u32 %s1719_s19, 4  ;;  %s1720_s23 = smov 384   ;;  %s83_s20 = int_to_ptr.vmem [resolvable:$true] %s82_s20 }
   0xd   :  { %s1721_s24 = smov 24   ;;  %s1722_s25 = smov [#allocation2]  }
   0xe   :  { %88 = dma.hbm_to_vmem [thread:$0]  %s81_s1, 12288, %s83_s20, [#allocation12], %s1720_s23, %s1720_s23, %s1721_s24  }
   0xf   :  { %s26_s26 = sshll.u32 %s1722_s25, 4  ;;  %s46_s5 = sshll.u32 %s2061_s2, 4  ;;  %s27_s26 = int_to_ptr.vmem [resolvable:$true] %s26_s26  ;;  %s47_s5 = int_to_ptr.hbm [resolvable:$true] %s46_s5 }
  0x10   :  { %29 = dma.hbm_to_vmem [thread:$0]  %s25_s3, 32, %s27_s26, [#allocation3]  }
  0x11   :  { %s70_s0 = sshll.u32 %s2063_s4, 4  ;;  %s1723_s9 = smov [#allocation7]   ;;  %s71_s0 = int_to_ptr.hbm [resolvable:$true] %s70_s0 }
  0x12   :  { %s48_s10 = sshll.u32 %s1723_s9, 4  ;;  %s1724_s11 = smov [#allocation10]   ;;  %s49_s10 = int_to_ptr.vmem [resolvable:$true] %s48_s10 }
  0x13   :  { %51 = dma.hbm_to_vmem [thread:$0]  %s47_s5, 64, %s49_s10, [#allocation6]  }
  0x14   :  { %s72_s12 = sshll.u32 %s1724_s11, 4  ;;  %s93_s15 = sshll.u32 %s2065_s6, 4  ;;  %s73_s12 = int_to_ptr.vmem [resolvable:$true] %s72_s12  ;;  %s94_s15 = int_to_ptr.hbm [resolvable:$true] %s93_s15 }
  0x15   :  { %75 = dma.hbm_to_vmem [thread:$0]  %s71_s0, 128, %s73_s12, [#allocation9]  }
  0x16   :  { %s107_s17 = sshll.u32 %s2066_s7, 4  ;;  %s1725_s18 = smov [#allocation13]   ;;  %s108_s17 = int_to_ptr.hbm [resolvable:$true] %s107_s17 }
  0x17   :  { %s95_s4 = sshll.u32 %s1725_s18, 4  ;;  %s1726_s1 = smov [#allocation14]   ;;  %s96_s4 = int_to_ptr.vmem [resolvable:$true] %s95_s4 }
  0x18   :  { %101 = dma.hbm_to_vmem [thread:$0]  %s94_s15, 9600, %s96_s4, [#allocation12], %s1720_s23, %s1720_s23, %s1721_s24  }
  0x19   :  { %s109_s19 = sshll.u32 %s1726_s1, 4  ;;  %s110_s19 = int_to_ptr.vmem [resolvable:$true] %s109_s19 }
  0x1a   :  { %112 = dma.hbm_to_vmem [thread:$0]  %s108_s17, 256, %s110_s19, [#allocation15]  }
  0x1b   :  { %1703 = dma.done.wait [#allocation3], 32  }
  0x1c   :  { %1704 = vsyncadd [#allocation3], 4294967264 }
  0x1d   :  { %1705 = dma.done.wait [#allocation6], 96  }
  0x1e   :  { %1706 = vsyncadd [#allocation6], 4294967200 }
  0x1f   :  { %1707 = dma.done.wait [#allocation9], 640  }
  0x20   :  { %1708 = vsyncadd [#allocation9], 4294966656 }
  0x21   :  { %1709 = dma.done.wait [#allocation12], 21888  }
  0x22   :  { %1710 = vsyncadd [#allocation12], 4294945408 }
  0x23   :  { %1711 = dma.done.wait [#allocation15], 256  }
  0x24   :  { %1712 = vsyncadd [#allocation15], 4294967040  ;;  %v162_v0 = vld [vmem:[#allocation10] sm:$0x77]  ;;  %vm682_vm0 = vcmask 1045504   ;;  %vm678_vm1 = vcmask 48128  }
  0x25   :  { %v153_v1 = vld [vmem:[#allocation8 + $0x18] sm:$0x77]  ;;  %v163_v2 = vunpack.c.l.bf16 %v162_v0  ;;  %v164_v3 = vunpack.c.h.bf16 %v162_v0  ;;  %v152_v7 = vld [vmem:[#allocation8 + $0x10] sm:$0xff]  ;;  %v151_v8 = vld [vmem:[#allocation8 + $0x8] sm:$0xff]  ;;  %vm729_vm2 = vcmask 244736   ;;  %vm1040_vm5 = vcmask 588800  }
  0x26   :  { %v146_v4 = vld [vmem:[#allocation5] sm:$0x3]  ;;  %v160_v5 = vunpack.c.l.bf16 %v153_v1  ;;  %v161_v6 = vunpack.c.h.bf16 %v153_v1  ;;  %v210_v9 = vld [vmem:[#allocation11 + $0x168] sm:$0xff]  ;;  %v158_v11 = vunpack.c.l.bf16 %v152_v7  ;;  %v159_v12 = vunpack.c.h.bf16 %v152_v7  ;;  %v204_v15 = vld [vmem:[#allocation11 + $0x138] sm:$0xff]  ;;  %s1727_s6 = smov [#allocation16]   ;;  %s1414_s22 = sshll.u32 %s2067_s8, 4  ;;  %s1415_s22 = int_to_ptr.hbm [resolvable:$true] %s1414_s22 }
  0x27   :  { %v207_v10 = vld [vmem:[#allocation11 + $0x150] sm:$0xff]  ;;  %1428 = vmatpush.msk.msra.mxu3 %vm682_vm0, %v163_v2  ;;  %1430 = vmatpush.msk.msra.mxu1 %vm682_vm0, %v164_v3  ;;  %v351_v13 = vunpack.c.l.bf16 %v210_v9  ;;  %v352_v14 = vunpack.c.h.bf16 %v210_v9  ;;  %v150_v16 = vld [vmem:[#allocation8] sm:$0xff]  ;;  %v156_v19 = vunpack.c.l.bf16 %v151_v8  ;;  %v157_v20 = vunpack.c.h.bf16 %v151_v8  ;;  %v201_v23 = vld [vmem:[#allocation11 + $0x120] sm:$0xff]  ;;  %s1412_s7 = sshll.u32 %s1727_s6, 4  ;;  %s1413_s7 = int_to_ptr.vmem [resolvable:$true] %s1412_s7 }
  0x28   :  { %1429 = vmatmul.msk.f32.vlgmr.msra.gmra.mxu3 %vm678_vm1, %v146_v4  ;;  %1431 = vmatmul.msk.f32.vlgmr.msra.gmra.mxu1 %vm678_vm1, %v146_v4  ;;  %v345_v17 = vunpack.c.l.bf16 %v207_v10  ;;  %v346_v18 = vunpack.c.h.bf16 %v207_v10  ;;  %v339_v21 = vunpack.c.l.bf16 %v204_v15  ;;  %v340_v22 = vunpack.c.h.bf16 %v204_v15  ;;  %v258_v24 = vld [vmem:[#allocation11 + $0x2e8] sm:$0xff]  ;;  %v255_v28 = vld [vmem:[#allocation11 + $0x2d0] sm:$0xff]  ;;  %v252_v35 = vld [vmem:[#allocation11 + $0x2b8] sm:$0xff] }
  0x29   :  { %1432 = vmatpush.msk.msrb.mxu1 %vm682_vm0, %v160_v5  ;;  %1434 = vmatpush.msk.msrb.mxu3 %vm682_vm0, %v161_v6  ;;  %v154_v25 = vunpack.c.l.bf16 %v150_v16  ;;  %v155_v26 = vunpack.c.h.bf16 %v150_v16  ;;  %v198_v27 = vld [vmem:[#allocation11 + $0x108] sm:$0xff]  ;;  %v145_v29 = vld [vmem:[#allocation2] sm:$0x3]  ;;  %v333_v30 = vunpack.c.l.bf16 %v201_v23  ;;  %v447_v31 = vunpack.c.l.bf16 %v258_v24  ;;  %v192_v40 = vld [vmem:[#allocation11 + $0xd8] sm:$0xff] }
  0x2a   :  { %795 = vmatpush.msra.mxu0 %v351_v13  ;;  %835 = vmatpush.msra.mxu2 %v352_v14  ;;  %v334_v32 = vunpack.c.h.bf16 %v201_v23  ;;  %v448_v33 = vunpack.c.h.bf16 %v258_v24  ;;  %v195_v34 = vld [vmem:[#allocation11 + $0xf0] sm:$0xff]  ;;  %v327_v36 = vunpack.c.l.bf16 %v198_v27  ;;  %v441_v37 = vunpack.c.l.bf16 %v255_v28  ;;  %v249_v41 = vld [vmem:[#allocation11 + $0x2a0] sm:$0xff]  ;;  %v246_v47 = vld [vmem:[#allocation11 + $0x288] sm:$0xff] }
  0x2b   :  { %752 = vmatpush.msrb.mxu1 %v158_v11  ;;  %772 = vmatpush.msrb.mxu3 %v159_v12  ;;  %v328_v38 = vunpack.c.h.bf16 %v198_v27  ;;  %v442_v39 = vunpack.c.h.bf16 %v255_v28  ;;  %v321_v42 = vunpack.c.l.bf16 %v195_v34  ;;  %v435_v43 = vunpack.c.l.bf16 %v252_v35  ;;  %v189_v46 = vld [vmem:[#allocation11 + $0xc0] sm:$0xff]  ;;  %v186_v52 = vld [vmem:[#allocation11 + $0xa8] sm:$0xff]  ;;  %v243_v53 = vld [vmem:[#allocation11 + $0x270] sm:$0xff] }
  0x2c   :  { %796 = vmatpush.msra.mxu0 %v345_v17  ;;  %836 = vmatpush.msra.mxu2 %v346_v18  ;;  %v322_v44 = vunpack.c.h.bf16 %v195_v34  ;;  %v436_v45 = vunpack.c.h.bf16 %v252_v35  ;;  %v315_v48 = vunpack.c.l.bf16 %v192_v40  ;;  %v429_v49 = vunpack.c.l.bf16 %v249_v41  ;;  %v183_v58 = vld [vmem:[#allocation11 + $0x90] sm:$0xff]  ;;  %v240_v59 = vld [vmem:[#allocation11 + $0x258] sm:$0xff]  ;;  %v237_v1 = vld [vmem:[#allocation11 + $0x240] sm:$0xff] }
  0x2d   :  { %753 = vmatpush.msrb.mxu1 %v156_v19  ;;  %773 = vmatpush.msrb.mxu3 %v157_v20  ;;  %v316_v50 = vunpack.c.h.bf16 %v192_v40  ;;  %v430_v51 = vunpack.c.h.bf16 %v249_v41  ;;  %v309_v54 = vunpack.c.l.bf16 %v189_v46  ;;  %v423_v55 = vunpack.c.l.bf16 %v246_v47  ;;  %v180_v0 = vld [vmem:[#allocation11 + $0x78] sm:$0xff]  ;;  %v177_v6 = vld [vmem:[#allocation11 + $0x60] sm:$0xff]  ;;  %v234_v7 = vld [vmem:[#allocation11 + $0x228] sm:$0xff] }
  0x2e   :  { %797 = vmatpush.msra.mxu0 %v339_v21  ;;  %837 = vmatpush.msra.mxu2 %v340_v22  ;;  %v310_v56 = vunpack.c.h.bf16 %v189_v46  ;;  %v424_v57 = vunpack.c.h.bf16 %v246_v47  ;;  %v303_v60 = vunpack.c.l.bf16 %v186_v52  ;;  %v417_v61 = vunpack.c.l.bf16 %v243_v53  ;;  %v174_v12 = vld [vmem:[#allocation11 + $0x48] sm:$0xff]  ;;  %v231_v13 = vld [vmem:[#allocation11 + $0x210] sm:$0xff]  ;;  %v228_v19 = vld [vmem:[#allocation11 + $0x1f8] sm:$0xff] }
  0x2f   :  { %754 = vmatpush.msrb.mxu1 %v154_v25  ;;  %774 = vmatpush.msrb.mxu3 %v155_v26  ;;  %v304_v62 = vunpack.c.h.bf16 %v186_v52  ;;  %v418_v63 = vunpack.c.h.bf16 %v243_v53  ;;  %v297_v2 = vunpack.c.l.bf16 %v183_v58  ;;  %v411_v3 = vunpack.c.l.bf16 %v240_v59  ;;  %v171_v18 = vld [vmem:[#allocation11 + $0x30] sm:$0xff]  ;;  %v168_v24 = vld [vmem:[#allocation11 + $0x18] sm:$0xff]  ;;  %v225_v25 = vld [vmem:[#allocation11 + $0x1e0] sm:$0xff] }
  0x30   :  { %1433 = vmatmul.msk.f32.vlgmr.msrb.gmra.mxu1 %vm729_vm2, %v145_v29  ;;  %1435 = vmatmul.msk.f32.vlgmr.msrb.gmra.mxu3 %vm729_vm2, %v145_v29  ;;  %v298_v4 = vunpack.c.h.bf16 %v183_v58  ;;  %v412_v5 = vunpack.c.h.bf16 %v240_v59  ;;  %v291_v8 = vunpack.c.l.bf16 %v180_v0  ;;  %v405_v9 = vunpack.c.l.bf16 %v237_v1  ;;  %v205_v52 = vld [vmem:[#allocation11 + $0x140] sm:$0xff]  ;;  %v202_v58 = vld [vmem:[#allocation11 + $0x128] sm:$0xff]  ;;  %v259_v59 = vld [vmem:[#allocation11 + $0x2f0] sm:$0xff] }
  0x31   :  { %798 = vmatpush.msra.mxu0 %v333_v30  ;;  %815 = vmatpush.msra.mxu1 %v447_v31  ;;  %v292_v10 = vunpack.c.h.bf16 %v180_v0  ;;  %v406_v11 = vunpack.c.h.bf16 %v237_v1  ;;  %v285_v14 = vunpack.c.l.bf16 %v177_v6  ;;  %v399_v15 = vunpack.c.l.bf16 %v234_v7  ;;  %v165_v30 = vld [vmem:[#allocation11] sm:$0xff]  ;;  %v222_v31 = vld [vmem:[#allocation11 + $0x1c8] sm:$0xff]  ;;  %v199_v0 = vld [vmem:[#allocation11 + $0x110] sm:$0xff] }
  0x32   :  { %838 = vmatpush.msra.mxu2 %v334_v32  ;;  %855 = vmatpush.msra.mxu3 %v448_v33  ;;  %v286_v16 = vunpack.c.h.bf16 %v177_v6  ;;  %v400_v17 = vunpack.c.h.bf16 %v234_v7  ;;  %v279_v20 = vunpack.c.l.bf16 %v174_v12  ;;  %v393_v21 = vunpack.c.l.bf16 %v231_v13  ;;  %v256_v1 = vld [vmem:[#allocation11 + $0x2d8] sm:$0xff]  ;;  %v253_v7 = vld [vmem:[#allocation11 + $0x2c0] sm:$0xff] }
  0x33   :  { %799 = vmatpush.msra.mxu0 %v327_v36  ;;  %816 = vmatpush.msra.mxu1 %v441_v37  ;;  %v280_v22 = vunpack.c.h.bf16 %v174_v12  ;;  %v394_v23 = vunpack.c.h.bf16 %v231_v13  ;;  %v273_v26 = vunpack.c.l.bf16 %v171_v18  ;;  %v387_v27 = vunpack.c.l.bf16 %v228_v19  ;;  %v211_v36 = vld [vmem:[#allocation11 + $0x170] sm:$0xff]  ;;  %v196_v6 = vld [vmem:[#allocation11 + $0xf8] sm:$0xff]  ;;  %v193_v12 = vld [vmem:[#allocation11 + $0xe0] sm:$0xff] }
  0x34   :  { %839 = vmatpush.msra.mxu2 %v328_v38  ;;  %856 = vmatpush.msra.mxu3 %v442_v39  ;;  %v274_v28 = vunpack.c.h.bf16 %v171_v18  ;;  %v388_v29 = vunpack.c.h.bf16 %v228_v19  ;;  %v267_v32 = vunpack.c.l.bf16 %v168_v24  ;;  %v381_v33 = vunpack.c.l.bf16 %v225_v25  ;;  %v219_v39 = vld [vmem:[#allocation11 + $0x1b0] sm:$0xff]  ;;  %v250_v13 = vld [vmem:[#allocation11 + $0x2a8] sm:$0xff] }
  0x35   :  { %800 = vmatpush.msra.mxu0 %v321_v42  ;;  %817 = vmatpush.msra.mxu1 %v435_v43  ;;  %v268_v34 = vunpack.c.h.bf16 %v168_v24  ;;  %v382_v35 = vunpack.c.h.bf16 %v225_v25  ;;  %v261_v37 = vunpack.c.l.bf16 %v165_v30  ;;  %v375_v38 = vunpack.c.l.bf16 %v222_v31  ;;  %v208_v42 = vld [vmem:[#allocation11 + $0x158] sm:$0xff]  ;;  %v190_v18 = vld [vmem:[#allocation11 + $0xc8] sm:$0xff]  ;;  %v247_v19 = vld [vmem:[#allocation11 + $0x290] sm:$0xff] }
  0x36   :  { %840 = vmatpush.msra.mxu2 %v322_v44  ;;  %857 = vmatpush.msra.mxu3 %v436_v45  ;;  %v262_v40 = vunpack.c.h.bf16 %v165_v30  ;;  %v376_v41 = vunpack.c.h.bf16 %v222_v31  ;;  %v353_v43 = vunpack.c.l.bf16 %v211_v36  ;;  %v354_v44 = vunpack.c.h.bf16 %v211_v36  ;;  %v216_v45 = vld [vmem:[#allocation11 + $0x198] sm:$0xff]  ;;  %v187_v24 = vld [vmem:[#allocation11 + $0xb0] sm:$0xff]  ;;  %v241_v31 = vld [vmem:[#allocation11 + $0x260] sm:$0xff] }
  0x37   :  { %801 = vmatpush.msra.mxu0 %v315_v48  ;;  %818 = vmatpush.msra.mxu1 %v429_v49  ;;  %v369_v46 = vunpack.c.l.bf16 %v219_v39  ;;  %v370_v47 = vunpack.c.h.bf16 %v219_v39  ;;  %v347_v48 = vunpack.c.l.bf16 %v208_v42  ;;  %v348_v49 = vunpack.c.h.bf16 %v208_v42  ;;  %v244_v25 = vld [vmem:[#allocation11 + $0x278] sm:$0xff]  ;;  %v181_v36 = vld [vmem:[#allocation11 + $0x80] sm:$0xff]  ;;  %v178_v42 = vld [vmem:[#allocation11 + $0x68] sm:$0xff] }
  0x38   :  { %841 = vmatpush.msra.mxu2 %v316_v50  ;;  %858 = vmatpush.msra.mxu3 %v430_v51  ;;  %v363_v50 = vunpack.c.l.bf16 %v216_v45  ;;  %v364_v51 = vunpack.c.h.bf16 %v216_v45  ;;  %v341_v53 = vunpack.c.l.bf16 %v205_v52  ;;  %v184_v30 = vld [vmem:[#allocation11 + $0x98] sm:$0xff] }
  0x39   :  { %802 = vmatpush.msra.mxu0 %v309_v54  ;;  %819 = vmatpush.msra.mxu1 %v423_v55  ;;  %v342_v54 = vunpack.c.h.bf16 %v205_v52  ;;  %v213_v55 = vld [vmem:[#allocation11 + $0x180] sm:$0xff] }
  0x3a   :  { %842 = vmatpush.msra.mxu2 %v310_v56  ;;  %859 = vmatpush.msra.mxu3 %v424_v57  ;;  %v357_v56 = vunpack.c.l.bf16 %v213_v55  ;;  %v358_v57 = vunpack.c.h.bf16 %v213_v55  ;;  %v229_v55 = vld [vmem:[#allocation11 + $0x200] sm:$0xff] }
  0x3b   :  { %803 = vmatpush.msra.mxu0 %v303_v60  ;;  %820 = vmatpush.msra.mxu1 %v417_v61  ;;  %v335_v60 = vunpack.c.l.bf16 %v202_v58  ;;  %v449_v61 = vunpack.c.l.bf16 %v259_v59 }
  0x3c   :  { %843 = vmatpush.msra.mxu2 %v304_v62  ;;  %860 = vmatpush.msra.mxu3 %v418_v63  ;;  %v336_v62 = vunpack.c.h.bf16 %v202_v58  ;;  %v450_v63 = vunpack.c.h.bf16 %v259_v59  ;;  %v390_v59 = vunpack.c.h.bf16 %v229_v55 }
  0x3d   :  { %804 = vmatpush.msra.mxu0 %v297_v2  ;;  %821 = vmatpush.msra.mxu1 %v411_v3  ;;  %v329_v2 = vunpack.c.l.bf16 %v199_v0  ;;  %v443_v3 = vunpack.c.l.bf16 %v256_v1 }
  0x3e   :  { %844 = vmatpush.msra.mxu2 %v298_v4  ;;  %861 = vmatpush.msra.mxu3 %v412_v5  ;;  %v330_v4 = vunpack.c.h.bf16 %v199_v0  ;;  %v444_v5 = vunpack.c.h.bf16 %v256_v1 }
  0x3f   :  { %805 = vmatpush.msra.mxu0 %v291_v8  ;;  %822 = vmatpush.msra.mxu1 %v405_v9  ;;  %v323_v8 = vunpack.c.l.bf16 %v196_v6  ;;  %v437_v9 = vunpack.c.l.bf16 %v253_v7 }
  0x40   :  { %845 = vmatpush.msra.mxu2 %v292_v10  ;;  %862 = vmatpush.msra.mxu3 %v406_v11  ;;  %v324_v10 = vunpack.c.h.bf16 %v196_v6  ;;  %v438_v11 = vunpack.c.h.bf16 %v253_v7 }
  0x41   :  { %806 = vmatpush.msra.mxu0 %v285_v14  ;;  %823 = vmatpush.msra.mxu1 %v399_v15  ;;  %v317_v14 = vunpack.c.l.bf16 %v193_v12  ;;  %v431_v15 = vunpack.c.l.bf16 %v250_v13 }
  0x42   :  { %846 = vmatpush.msra.mxu2 %v286_v16  ;;  %863 = vmatpush.msra.mxu3 %v400_v17  ;;  %v318_v16 = vunpack.c.h.bf16 %v193_v12  ;;  %v432_v17 = vunpack.c.h.bf16 %v250_v13 }
  0x43   :  { %807 = vmatpush.msra.mxu0 %v279_v20  ;;  %824 = vmatpush.msra.mxu1 %v393_v21  ;;  %v311_v20 = vunpack.c.l.bf16 %v190_v18  ;;  %v425_v21 = vunpack.c.l.bf16 %v247_v19 }
  0x44   :  { %847 = vmatpush.msra.mxu2 %v280_v22  ;;  %864 = vmatpush.msra.mxu3 %v394_v23  ;;  %v312_v22 = vunpack.c.h.bf16 %v190_v18  ;;  %v426_v23 = vunpack.c.h.bf16 %v247_v19  ;;  %v148_v18 = vld [vmem:[#allocation14] sm:$0xff] }
  0x45   :  { %808 = vmatpush.msra.mxu0 %v273_v26  ;;  %825 = vmatpush.msra.mxu1 %v387_v27  ;;  %v305_v26 = vunpack.c.l.bf16 %v187_v24  ;;  %v419_v27 = vunpack.c.l.bf16 %v244_v25 }
  0x46   :  { %848 = vmatpush.msra.mxu2 %v274_v28  ;;  %865 = vmatpush.msra.mxu3 %v388_v29  ;;  %v306_v28 = vunpack.c.h.bf16 %v187_v24  ;;  %v420_v29 = vunpack.c.h.bf16 %v244_v25 }
  0x47   :  { %809 = vmatpush.msra.mxu0 %v267_v32  ;;  %826 = vmatpush.msra.mxu1 %v381_v33  ;;  %v299_v32 = vunpack.c.l.bf16 %v184_v30  ;;  %v413_v33 = vunpack.c.l.bf16 %v241_v31 }
  0x48   :  { %849 = vmatpush.msra.mxu2 %v268_v34  ;;  %866 = vmatpush.msra.mxu3 %v382_v35  ;;  %v300_v34 = vunpack.c.h.bf16 %v184_v30  ;;  %v414_v35 = vunpack.c.h.bf16 %v241_v31 }
  0x49   :  { %810 = vmatpush.msra.mxu0 %v261_v37  ;;  %827 = vmatpush.msra.mxu1 %v375_v38  ;;  %v238_v37 = vld [vmem:[#allocation11 + $0x248] sm:$0xff]  ;;  %v293_v38 = vunpack.c.l.bf16 %v181_v36 }
  0x4a   :  { %850 = vmatpush.msra.mxu2 %v262_v40  ;;  %867 = vmatpush.msra.mxu3 %v376_v41  ;;  %v407_v39 = vunpack.c.l.bf16 %v238_v37  ;;  %v294_v40 = vunpack.c.h.bf16 %v181_v36  ;;  %v408_v41 = vunpack.c.h.bf16 %v238_v37 }
  0x4b   :  { %875 = vmatpush.msrb.mxu0 %v353_v43  ;;  %828 = vmatpush.msra.mxu1 %v369_v46  ;;  %v235_v43 = vld [vmem:[#allocation11 + $0x230] sm:$0xff]  ;;  %v288_v46 = vunpack.c.h.bf16 %v178_v42 }
  0x4c   :  { %915 = vmatpush.msrb.mxu2 %v354_v44  ;;  %868 = vmatpush.msra.mxu3 %v370_v47  ;;  %v287_v44 = vunpack.c.l.bf16 %v178_v42  ;;  %v401_v45 = vunpack.c.l.bf16 %v235_v43  ;;  %v402_v47 = vunpack.c.h.bf16 %v235_v43  ;;  %v203_v43 = vld [vmem:[#allocation11 + $0x130] sm:$0xff] }
  0x4d   :  { %876 = vmatpush.msrb.mxu0 %v347_v48  ;;  %829 = vmatpush.msra.mxu1 %v363_v50  ;;  %v175_v48 = vld [vmem:[#allocation11 + $0x50] sm:$0xff] }
  0x4e   :  { %916 = vmatpush.msrb.mxu2 %v348_v49  ;;  %869 = vmatpush.msra.mxu3 %v364_v51  ;;  %v232_v49 = vld [vmem:[#allocation11 + $0x218] sm:$0xff]  ;;  %v281_v50 = vunpack.c.l.bf16 %v175_v48  ;;  %v282_v52 = vunpack.c.h.bf16 %v175_v48 }
  0x4f   :  { %877 = vmatpush.msrb.mxu0 %v341_v53  ;;  %830 = vmatpush.msra.mxu1 %v357_v56  ;;  %v395_v51 = vunpack.c.l.bf16 %v232_v49  ;;  %v396_v53 = vunpack.c.h.bf16 %v232_v49  ;;  %v337_v49 = vunpack.c.l.bf16 %v203_v43 }
  0x50   :  { %917 = vmatpush.msrb.mxu2 %v342_v54  ;;  %870 = vmatpush.msra.mxu3 %v358_v57  ;;  %v172_v54 = vld [vmem:[#allocation11 + $0x38] sm:$0xff]  ;;  %v389_v57 = vunpack.c.l.bf16 %v229_v55 }
  0x51   :  { %878 = vmatpush.msrb.mxu0 %v335_v60  ;;  %895 = vmatpush.msrb.mxu1 %v449_v61  ;;  %v275_v56 = vunpack.c.l.bf16 %v172_v54  ;;  %v276_v58 = vunpack.c.h.bf16 %v172_v54  ;;  %v169_v60 = vld [vmem:[#allocation11 + $0x20] sm:$0xff]  ;;  %v226_v61 = vld [vmem:[#allocation11 + $0x1e8] sm:$0xff] }
  0x52   :  { %918 = vmatpush.msrb.mxu2 %v336_v62  ;;  %935 = vmatpush.msrb.mxu3 %v450_v63  ;;  %v269_v62 = vunpack.c.l.bf16 %v169_v60  ;;  %v383_v63 = vunpack.c.l.bf16 %v226_v61  ;;  %v270_v0 = vunpack.c.h.bf16 %v169_v60  ;;  %v384_v1 = vunpack.c.h.bf16 %v226_v61 }
  0x53   :  { %879 = vmatpush.msrb.mxu0 %v329_v2  ;;  %896 = vmatpush.msrb.mxu1 %v443_v3  ;;  %v166_v2 = vld [vmem:[#allocation11 + $0x8] sm:$0xff]  ;;  %v223_v3 = vld [vmem:[#allocation11 + $0x1d0] sm:$0xff] }
  0x54   :  { %919 = vmatpush.msrb.mxu2 %v330_v4  ;;  %936 = vmatpush.msrb.mxu3 %v444_v5  ;;  %v263_v4 = vunpack.c.l.bf16 %v166_v2  ;;  %v377_v5 = vunpack.c.l.bf16 %v223_v3  ;;  %v264_v6 = vunpack.c.h.bf16 %v166_v2  ;;  %v378_v7 = vunpack.c.h.bf16 %v223_v3 }
  0x55   :  { %880 = vmatpush.msrb.mxu0 %v323_v8  ;;  %897 = vmatpush.msrb.mxu1 %v437_v9  ;;  %v220_v8 = vld [vmem:[#allocation11 + $0x1b8] sm:$0xff] }
  0x56   :  { %920 = vmatpush.msrb.mxu2 %v324_v10  ;;  %937 = vmatpush.msrb.mxu3 %v438_v11  ;;  %v371_v9 = vunpack.c.l.bf16 %v220_v8  ;;  %v372_v10 = vunpack.c.h.bf16 %v220_v8  ;;  %v217_v11 = vld [vmem:[#allocation11 + $0x1a0] sm:$0xff] }
  0x57   :  { %881 = vmatpush.msrb.mxu0 %v317_v14  ;;  %898 = vmatpush.msrb.mxu1 %v431_v15  ;;  %v365_v12 = vunpack.c.l.bf16 %v217_v11  ;;  %v366_v13 = vunpack.c.h.bf16 %v217_v11  ;;  %v214_v14 = vld [vmem:[#allocation11 + $0x188] sm:$0xff]  ;;  %v245_v11 = vld [vmem:[#allocation11 + $0x280] sm:$0xff] }
  0x58   :  { %921 = vmatpush.msrb.mxu2 %v318_v16  ;;  %938 = vmatpush.msrb.mxu3 %v432_v17  ;;  %v359_v15 = vunpack.c.l.bf16 %v214_v14  ;;  %v360_v16 = vunpack.c.h.bf16 %v214_v14 }
  0x59   :  { %882 = vmatpush.msrb.mxu0 %v311_v20  ;;  %899 = vmatpush.msrb.mxu1 %v425_v21  ;;  %v779_v20 = vperm.slane %v148_v18, 0 }
  0x5a   :  { %922 = vmatpush.msrb.mxu2 %v312_v22  ;;  %939 = vmatpush.msrb.mxu3 %v426_v23  ;;  %v149_v23 = vld [vmem:[#allocation14 + $0x8] sm:$0xff] }
  0x5b   :  { %883 = vmatpush.msrb.mxu0 %v305_v26  ;;  %900 = vmatpush.msrb.mxu1 %v419_v27  ;;  %v780_v26 = vperm.slane %v149_v23, 0  ;;  %v239_v23 = vld [vmem:[#allocation11 + $0x250] sm:$0xff] }
  0x5c   :  { %923 = vmatpush.msrb.mxu2 %v306_v28  ;;  %940 = vmatpush.msrb.mxu3 %v420_v29 }
  0x5d   :  { %884 = vmatpush.msrb.mxu0 %v299_v32  ;;  %901 = vmatpush.msrb.mxu1 %v413_v33  ;;  %v212_v33 = vld [vmem:[#allocation11 + $0x178] sm:$0xff] }
  0x5e   :  { %924 = vmatpush.msrb.mxu2 %v300_v34  ;;  %941 = vmatpush.msrb.mxu3 %v414_v35  ;;  %v209_v35 = vld [vmem:[#allocation11 + $0x160] sm:$0xff]  ;;  %v355_v37 = vunpack.c.l.bf16 %v212_v33 }
  0x5f   :  { %885 = vmatpush.msrb.mxu0 %v293_v38  ;;  %902 = vmatpush.msrb.mxu1 %v407_v39  ;;  %v356_v38 = vunpack.c.h.bf16 %v212_v33  ;;  %v206_v39 = vld [vmem:[#allocation11 + $0x148] sm:$0xff]  ;;  %v350_v42 = vunpack.c.h.bf16 %v209_v35  ;;  %v410_v33 = vunpack.c.h.bf16 %v239_v23 }
  0x60   :  { %925 = vmatpush.msrb.mxu2 %v294_v40  ;;  %942 = vmatpush.msrb.mxu3 %v408_v41  ;;  %v349_v41 = vunpack.c.l.bf16 %v209_v35  ;;  %v233_v35 = vld [vmem:[#allocation11 + $0x220] sm:$0xff] }
  0x61   :  { %886 = vmatpush.msrb.mxu0 %v287_v44  ;;  %903 = vmatpush.msrb.mxu1 %v401_v45  ;;  %v260_v44 = vld [vmem:[#allocation11 + $0x2f8] sm:$0xff]  ;;  %v343_v45 = vunpack.c.l.bf16 %v206_v39 }
  0x62   :  { %926 = vmatpush.msrb.mxu2 %v288_v46  ;;  %943 = vmatpush.msrb.mxu3 %v402_v47  ;;  %v344_v46 = vunpack.c.h.bf16 %v206_v39  ;;  %v452_v54 = vunpack.c.h.bf16 %v260_v44 }
  0x63   :  { %887 = vmatpush.msrb.mxu0 %v281_v50  ;;  %904 = vmatpush.msrb.mxu1 %v395_v51  ;;  %v451_v50 = vunpack.c.l.bf16 %v260_v44  ;;  %v200_v51 = vld [vmem:[#allocation11 + $0x118] sm:$0xff]  ;;  %v397_v44 = vunpack.c.l.bf16 %v233_v35 }
  0x64   :  { %927 = vmatpush.msrb.mxu2 %v282_v52  ;;  %944 = vmatpush.msrb.mxu3 %v396_v53  ;;  %v257_v52 = vld [vmem:[#allocation11 + $0x2e0] sm:$0xff]  ;;  %v338_v53 = vunpack.c.h.bf16 %v203_v43  ;;  %v332_v60 = vunpack.c.h.bf16 %v200_v51 }
  0x65   :  { %888 = vmatpush.msrb.mxu0 %v275_v56  ;;  %905 = vmatpush.msrb.mxu1 %v389_v57  ;;  %v197_v56 = vld [vmem:[#allocation11 + $0x100] sm:$0xff]  ;;  %v254_v57 = vld [vmem:[#allocation11 + $0x2c8] sm:$0xff]  ;;  %v446_v61 = vunpack.c.h.bf16 %v257_v52 }
  0x66   :  { %928 = vmatpush.msrb.mxu2 %v276_v58  ;;  %945 = vmatpush.msrb.mxu3 %v390_v59  ;;  %v331_v58 = vunpack.c.l.bf16 %v200_v51  ;;  %v445_v59 = vunpack.c.l.bf16 %v257_v52  ;;  %v326_v2 = vunpack.c.h.bf16 %v197_v56  ;;  %v440_v3 = vunpack.c.h.bf16 %v254_v57 }
  0x67   :  { %889 = vmatpush.msrb.mxu0 %v269_v62  ;;  %906 = vmatpush.msrb.mxu1 %v383_v63  ;;  %v194_v62 = vld [vmem:[#allocation11 + $0xe8] sm:$0xff]  ;;  %v251_v63 = vld [vmem:[#allocation11 + $0x2b0] sm:$0xff] }
  0x68   :  { %929 = vmatpush.msrb.mxu2 %v270_v0  ;;  %946 = vmatpush.msrb.mxu3 %v384_v1  ;;  %v325_v0 = vunpack.c.l.bf16 %v197_v56  ;;  %v439_v1 = vunpack.c.l.bf16 %v254_v57  ;;  %v320_v8 = vunpack.c.h.bf16 %v194_v62 }
  0x69   :  { %890 = vmatpush.msrb.mxu0 %v263_v4  ;;  %907 = vmatpush.msrb.mxu1 %v377_v5  ;;  %v319_v4 = vunpack.c.l.bf16 %v194_v62  ;;  %v433_v5 = vunpack.c.l.bf16 %v251_v63 }
  0x6a   :  { %930 = vmatpush.msrb.mxu2 %v264_v6  ;;  %947 = vmatpush.msrb.mxu3 %v378_v7  ;;  %v191_v6 = vld [vmem:[#allocation11 + $0xd0] sm:$0xff]  ;;  %v248_v7 = vld [vmem:[#allocation11 + $0x298] sm:$0xff] }
  0x6b   :  { %908 = vmatpush.msrb.mxu1 %v371_v9  ;;  %v434_v9 = vunpack.c.h.bf16 %v251_v63  ;;  %v314_v14 = vunpack.c.h.bf16 %v191_v6  ;;  %v498_v63 = vld [vmem:[#allocation13 + $0x168] sm:$0xff] }
  0x6c   :  { %948 = vmatpush.msrb.mxu3 %v372_v10  ;;  %v188_v10 = vld [vmem:[#allocation11 + $0xb8] sm:$0xff] }
  0x6d   :  { %909 = vmatpush.msrb.mxu1 %v365_v12  ;;  %v313_v12 = vunpack.c.l.bf16 %v191_v6  ;;  %v307_v18 = vunpack.c.l.bf16 %v188_v10  ;;  %v218_v6 = vld [vmem:[#allocation11 + $0x1a8] sm:$0xff] }
  0x6e   :  { %949 = vmatpush.msrb.mxu3 %v366_v13  ;;  %v427_v13 = vunpack.c.l.bf16 %v248_v7 }
  0x6f   :  { %910 = vmatpush.msrb.mxu1 %v359_v15  ;;  %v428_v15 = vunpack.c.h.bf16 %v248_v7 }
  0x70   :  { %950 = vmatpush.msrb.mxu3 %v360_v16  ;;  %v185_v16 = vld [vmem:[#allocation11 + $0xa0] sm:$0xff] }
  0xa5   :  { %v726_v17 = vpop.f32.mrf.mxu1 }
  0xab   :  { %v706_v19 = vpop.f32.mrf.mxu3 }
  0xad   :  { %v756_v21 = vpop.f32.mrf.mxu1 }
  0xae   :  { %v757_v22 = vadd.f32 %v756_v21, %v706_v19  ;;  %v421_v19 = vunpack.c.l.bf16 %v245_v11  ;;  %v422_v21 = vunpack.c.h.bf16 %v245_v11 }
  0xb0   :  { %v781_v24 = vadd.f32 %v779_v20, %v757_v22  ;;  %v308_v20 = vunpack.c.h.bf16 %v188_v10  ;;  %v182_v22 = vld [vmem:[#allocation11 + $0x88] sm:$0xff] }
  0xb2   :  { %v785_v25 = vmin.f32 %v781_v24, 0.0  ;;  %vm783_vm3 = vcmp.gt.f32.partialorder %v781_v24, 0.0 }
  0xb3   :  { %v776_v27 = vpop.f32.mrf.mxu3 }
  0xb4   :  { %v787_v28 = vmul.f32 1.442695, %v785_v25  ;;  %v777_v29 = vadd.f32 %v776_v27, %v726_v17  ;;  %v242_v17 = vld [vmem:[#allocation11 + $0x268] sm:$0xff] }
  0xb5   :  { %v415_v25 = vunpack.c.l.bf16 %v242_v17  ;;  %v416_v27 = vunpack.c.h.bf16 %v242_v17 }
  0xb6   :  { %1461 = vpow2.f32 %v787_v28  ;;  %v782_v30 = vadd.f32 %v780_v26, %v777_v29  ;;  %v302_v26 = vunpack.c.h.bf16 %v185_v16  ;;  %v179_v28 = vld [vmem:[#allocation11 + $0x70] sm:$0xff]  ;;  %v236_v29 = vld [vmem:[#allocation11 + $0x238] sm:$0xff] }
  0xb7   :  { %v404_v39 = vunpack.c.h.bf16 %v236_v29 }
  0xb8   :  { %v786_v31 = vmin.f32 %v782_v30, 0.0  ;;  %vm784_vm4 = vcmp.gt.f32.partialorder %v782_v30, 0.0 }
  0xba   :  { %v789_v32 = vmul.f32 1.442695, %v786_v31  ;;  %v409_v31 = vunpack.c.l.bf16 %v239_v23  ;;  %v522_v23 = vld [vmem:[#allocation13 + $0x228] sm:$0xff] }
  0xbc   :  { %v1462_v34 = vpop.eup %1461  ;;  %1463 = vpow2.f32 %v789_v32  ;;  %v296_v32 = vunpack.c.h.bf16 %v182_v22 }
  0xbd   :  { %v1436_v36 = vadd.f32 -1.0, %v1462_v34  ;;  %v176_v34 = vld [vmem:[#allocation11 + $0x58] sm:$0xff] }
  0xbe   :  { %v283_v43 = vunpack.c.l.bf16 %v176_v34 }
  0xbf   :  { %v1809_v40 = vsel %vm783_vm3, %v781_v24, %v1436_v36  ;;  %v301_v24 = vunpack.c.l.bf16 %v185_v16  ;;  %v289_v36 = vunpack.c.l.bf16 %v179_v28  ;;  %v525_v16 = vld [vmem:[#allocation13 + $0x240] sm:$0xff] }
  0xc0   :  { %811 = vmatmul.f32.vlgmr.msra.gmra.mxu0 %v1809_v40  ;;  %851 = vmatmul.f32.vlgmr.msra.gmra.mxu2 %v1809_v40 }
  0xc1   :  { %955 = vmatpush.msra.mxu0 %v355_v37  ;;  %995 = vmatpush.msra.mxu2 %v356_v38  ;;  %v403_v37 = vunpack.c.l.bf16 %v236_v29  ;;  %v290_v38 = vunpack.c.h.bf16 %v179_v28  ;;  %v483_v28 = vld [vmem:[#allocation13 + $0xf0] sm:$0xff] }
  0xc2   :  { %v1464_v47 = vpop.eup %1463  ;;  %v519_v29 = vld [vmem:[#allocation13 + $0x210] sm:$0xff] }
  0xc3   :  { %v1437_v48 = vadd.f32 -1.0, %v1464_v47  ;;  %956 = vmatpush.msra.mxu0 %v349_v41  ;;  %996 = vmatpush.msra.mxu2 %v350_v42  ;;  %v173_v41 = vld [vmem:[#allocation11 + $0x40] sm:$0xff]  ;;  %v230_v42 = vld [vmem:[#allocation11 + $0x208] sm:$0xff] }
  0xc4   :  { %v170_v47 = vld [vmem:[#allocation11 + $0x28] sm:$0xff]  ;;  %v278_v51 = vunpack.c.h.bf16 %v173_v41  ;;  %v392_v52 = vunpack.c.h.bf16 %v230_v42 }
  0xc5   :  { %v1813_v55 = vsel %vm784_vm4, %v782_v30, %v1437_v48  ;;  %957 = vmatpush.msra.mxu0 %v343_v45  ;;  %997 = vmatpush.msra.mxu2 %v344_v46  ;;  %v295_v30 = vunpack.c.l.bf16 %v182_v22  ;;  %v284_v45 = vunpack.c.h.bf16 %v176_v34  ;;  %v398_v46 = vunpack.c.h.bf16 %v233_v35  ;;  %v227_v48 = vld [vmem:[#allocation11 + $0x1f0] sm:$0xff]  ;;  %v480_v34 = vld [vmem:[#allocation13 + $0xd8] sm:$0xff] }
  0xc6   :  { %831 = vmatmul.f32.vlgmr.msra.gmra.mxu1 %v1813_v55  ;;  %871 = vmatmul.f32.vlgmr.msra.gmra.mxu3 %v1813_v55  ;;  %v271_v56 = vunpack.c.l.bf16 %v170_v47  ;;  %v385_v57 = vunpack.c.l.bf16 %v227_v48  ;;  %v516_v35 = vld [vmem:[#allocation13 + $0x1f8] sm:$0xff] }
  0xc7   :  { %958 = vmatpush.msra.mxu0 %v337_v49  ;;  %975 = vmatpush.msra.mxu1 %v451_v50  ;;  %v277_v49 = vunpack.c.l.bf16 %v173_v41  ;;  %v391_v50 = vunpack.c.l.bf16 %v230_v42  ;;  %v477_v41 = vld [vmem:[#allocation13 + $0xc0] sm:$0xff] }
  0xc8   :  { %998 = vmatpush.msra.mxu2 %v338_v53  ;;  %1015 = vmatpush.msra.mxu3 %v452_v54  ;;  %v167_v53 = vld [vmem:[#allocation11 + $0x10] sm:$0xff]  ;;  %v224_v54 = vld [vmem:[#allocation11 + $0x1d8] sm:$0xff]  ;;  %v513_v42 = vld [vmem:[#allocation13 + $0x1e0] sm:$0xff] }
  0xc9   :  { %891 = vmatmul.f32.vlgmr.msrb.gmra.mxu0 %v1809_v40  ;;  %931 = vmatmul.f32.vlgmr.msrb.gmra.mxu2 %v1809_v40  ;;  %v379_v62 = vunpack.c.l.bf16 %v224_v54 }
  0xca   :  { %959 = vmatpush.msra.mxu0 %v331_v58  ;;  %976 = vmatpush.msra.mxu1 %v445_v59  ;;  %v272_v58 = vunpack.c.h.bf16 %v170_v47  ;;  %v386_v59 = vunpack.c.h.bf16 %v227_v48  ;;  %v510_v47 = vld [vmem:[#allocation13 + $0x1c8] sm:$0xff]  ;;  %v576_v48 = vunpack.c.l.bf16 %v477_v41 }
  0xcb   :  { %999 = vmatpush.msra.mxu2 %v332_v60  ;;  %1016 = vmatpush.msra.mxu3 %v446_v61  ;;  %v147_v60 = vld [vmem:[#allocation7] sm:$0xf]  ;;  %v265_v61 = vunpack.c.l.bf16 %v167_v53 }
  0xcc   :  { %960 = vmatpush.msra.mxu0 %v325_v0  ;;  %977 = vmatpush.msra.mxu1 %v439_v1  ;;  %1036 = vst [vmem:[#allocation1] ss:$4 sm:$0xff] %v147_v60  ;;  %v266_v0 = vunpack.c.h.bf16 %v167_v53  ;;  %v380_v1 = vunpack.c.h.bf16 %v224_v54  ;;  %v507_v53 = vld [vmem:[#allocation13 + $0x1b0] sm:$0xff] }
  0xcd   :  { %1000 = vmatpush.msra.mxu2 %v326_v2  ;;  %1017 = vmatpush.msra.mxu3 %v440_v3  ;;  %v221_v2 = vld [vmem:[#allocation11 + $0x1c0] sm:$0xff]  ;;  %v495_v3 = vld [vmem:[#allocation13 + $0x150] sm:$0xff] }
  0xce   :  { %961 = vmatpush.msra.mxu0 %v319_v4  ;;  %978 = vmatpush.msra.mxu1 %v433_v5  ;;  %v618_v4 = vunpack.c.l.bf16 %v498_v63  ;;  %v619_v5 = vunpack.c.h.bf16 %v498_v63  ;;  %v373_v7 = vunpack.c.l.bf16 %v221_v2  ;;  %v612_v10 = vunpack.c.l.bf16 %v495_v3 }
  0xcf   :  { %1001 = vmatpush.msra.mxu2 %v320_v8  ;;  %1018 = vmatpush.msra.mxu3 %v434_v9  ;;  %v374_v8 = vunpack.c.h.bf16 %v221_v2  ;;  %v492_v9 = vld [vmem:[#allocation13 + $0x138] sm:$0xff]  ;;  %v613_v11 = vunpack.c.h.bf16 %v495_v3  ;;  %v501_v2 = vld [vmem:[#allocation13 + $0x180] sm:$0xff] }
  0xd0   :  { %911 = vmatmul.f32.vlgmr.msrb.gmra.mxu1 %v1813_v55  ;;  %951 = vmatmul.f32.vlgmr.msrb.gmra.mxu3 %v1813_v55  ;;  %v606_v17 = vunpack.c.l.bf16 %v492_v9 }
  0xd1   :  { %962 = vmatpush.msra.mxu0 %v313_v12  ;;  %979 = vmatpush.msra.mxu1 %v427_v13  ;;  %v215_v12 = vld [vmem:[#allocation11 + $0x190] sm:$0xff]  ;;  %v367_v13 = vunpack.c.l.bf16 %v218_v6 }
  0xd2   :  { %1002 = vmatpush.msra.mxu2 %v314_v14  ;;  %1019 = vmatpush.msra.mxu3 %v428_v15  ;;  %v368_v14 = vunpack.c.h.bf16 %v218_v6  ;;  %v489_v15 = vld [vmem:[#allocation13 + $0x120] sm:$0xff]  ;;  %v362_v22 = vunpack.c.h.bf16 %v215_v12 }
  0xd3   :  { %963 = vmatpush.msra.mxu0 %v307_v18  ;;  %980 = vmatpush.msra.mxu1 %v421_v19  ;;  %v607_v18 = vunpack.c.h.bf16 %v492_v9  ;;  %v1823_v19 = vld.sshfl [vmem:[#allocation1] sm:$0xff pattern:$0x73625140] }
  0xd4   :  { %1003 = vmatpush.msra.mxu2 %v308_v20  ;;  %1020 = vmatpush.msra.mxu3 %v422_v21  ;;  %v1825_v20 = vld.sshfl [vmem:[#allocation1 + $0x8] sm:$0xff pattern:$0x73625140]  ;;  %v361_v21 = vunpack.c.l.bf16 %v215_v12 }
  0xd5   :  { %964 = vmatpush.msra.mxu0 %v301_v24  ;;  %981 = vmatpush.msra.mxu1 %v415_v25  ;;  %1389 = vst [vmem:[#allocation1] ss:$4 sm:$0xff] %v147_v60  ;;  %v600_v24 = vunpack.c.l.bf16 %v489_v15  ;;  %v672_v25 = vunpack.c.l.bf16 %v525_v16  ;;  %v504_v60 = vld [vmem:[#allocation13 + $0x198] sm:$0xff] }
  0xd6   :  { %1004 = vmatpush.msra.mxu2 %v302_v26  ;;  %1021 = vmatpush.msra.mxu3 %v416_v27  ;;  %v601_v26 = vunpack.c.h.bf16 %v489_v15  ;;  %v673_v27 = vunpack.c.h.bf16 %v525_v16  ;;  %v631_v6 = vunpack.c.h.bf16 %v504_v60  ;;  %v1835_v15 = vld [vmem:[#allocation13 + $0x230] sm:$0xff] }
  0xd7   :  { %965 = vmatpush.msra.mxu0 %v295_v30  ;;  %982 = vmatpush.msra.mxu1 %v409_v31  ;;  %v666_v31 = vunpack.c.l.bf16 %v522_v23 }
  0xd8   :  { %1005 = vmatpush.msra.mxu2 %v296_v32  ;;  %1022 = vmatpush.msra.mxu3 %v410_v33  ;;  %v667_v33 = vunpack.c.h.bf16 %v522_v23  ;;  %v1841_v23 = vld [vmem:[#allocation13 + $0x218] sm:$0xff] }
  0xd9   :  { %966 = vmatpush.msra.mxu0 %v289_v36  ;;  %983 = vmatpush.msra.mxu1 %v403_v37  ;;  %v588_v36 = vunpack.c.l.bf16 %v483_v28  ;;  %v660_v37 = vunpack.c.l.bf16 %v519_v29 }
  0xda   :  { %1006 = vmatpush.msra.mxu2 %v290_v38  ;;  %1023 = vmatpush.msra.mxu3 %v404_v39  ;;  %v589_v38 = vunpack.c.h.bf16 %v483_v28  ;;  %v661_v39 = vunpack.c.h.bf16 %v519_v29  ;;  %v1845_v29 = vld [vmem:[#allocation13 + $0x128] sm:$0xff] }
  0xdb   :  { %967 = vmatpush.msra.mxu0 %v283_v43  ;;  %984 = vmatpush.msra.mxu1 %v397_v44  ;;  %v582_v43 = vunpack.c.l.bf16 %v480_v34  ;;  %v654_v44 = vunpack.c.l.bf16 %v516_v35 }
  0xdc   :  { %1007 = vmatpush.msra.mxu2 %v284_v45  ;;  %1024 = vmatpush.msra.mxu3 %v398_v46  ;;  %v655_v45 = vunpack.c.h.bf16 %v516_v35  ;;  %v474_v46 = vld [vmem:[#allocation13 + $0xa8] sm:$0xff] }
  0xdd   :  { %968 = vmatpush.msra.mxu0 %v277_v49  ;;  %985 = vmatpush.msra.mxu1 %v391_v50  ;;  %v648_v49 = vunpack.c.l.bf16 %v513_v42  ;;  %v577_v50 = vunpack.c.h.bf16 %v477_v41  ;;  %v570_v54 = vunpack.c.l.bf16 %v474_v46  ;;  %v1853_v41 = vld [vmem:[#allocation13 + $0x110] sm:$0xff] }
  0xde   :  { %1008 = vmatpush.msra.mxu2 %v278_v51  ;;  %1025 = vmatpush.msra.mxu3 %v392_v52  ;;  %v649_v51 = vunpack.c.h.bf16 %v513_v42  ;;  %v471_v52 = vld [vmem:[#allocation13 + $0x90] sm:$0xff]  ;;  %v1855_v42 = vld [vmem:[#allocation13 + $0x1e8] sm:$0xff] }
  0xdf   :  { %969 = vmatpush.msra.mxu0 %v271_v56  ;;  %986 = vmatpush.msra.mxu1 %v385_v57  ;;  %v642_v56 = vunpack.c.l.bf16 %v510_v47  ;;  %v571_v57 = vunpack.c.h.bf16 %v474_v46  ;;  %v565_v63 = vunpack.c.h.bf16 %v471_v52 }
  0xe0   :  { %1009 = vmatpush.msra.mxu2 %v272_v58  ;;  %1026 = vmatpush.msra.mxu3 %v386_v59  ;;  %v643_v58 = vunpack.c.h.bf16 %v510_v47  ;;  %v468_v59 = vld [vmem:[#allocation13 + $0x78] sm:$0xff] }
  0xe1   :  { %970 = vmatpush.msra.mxu0 %v265_v61  ;;  %987 = vmatpush.msra.mxu1 %v379_v62  ;;  %v564_v61 = vunpack.c.l.bf16 %v471_v52  ;;  %v636_v62 = vunpack.c.l.bf16 %v507_v53  ;;  %v558_v3 = vunpack.c.l.bf16 %v468_v59 }
  0xe2   :  { %1010 = vmatpush.msra.mxu2 %v266_v0  ;;  %1027 = vmatpush.msra.mxu3 %v380_v1  ;;  %v637_v0 = vunpack.c.h.bf16 %v507_v53  ;;  %v465_v1 = vld [vmem:[#allocation13 + $0x60] sm:$0xff]  ;;  %v669_v53 = vunpack.c.h.bf16 %v1835_v15 }
  0xe3   :  { %971 = vmatmul.f32.vlgmr.msra.gmra.mxu0 %v1809_v40  ;;  %1011 = vmatmul.f32.vlgmr.msra.gmra.mxu2 %v1809_v40  ;;  %v486_v40 = vld [vmem:[#allocation13 + $0x108] sm:$0xff]  ;;  %v552_v9 = vunpack.c.l.bf16 %v465_v1  ;;  %v553_v12 = vunpack.c.h.bf16 %v465_v1  ;;  %v603_v1 = vunpack.c.h.bf16 %v1845_v29 }
  0xe4   :  { %1043 = vmatpush.msrb.mxu0 %v618_v4  ;;  %1083 = vmatpush.msrb.mxu2 %v619_v5  ;;  %v594_v30 = vunpack.c.l.bf16 %v486_v40  ;;  %v595_v32 = vunpack.c.h.bf16 %v486_v40  ;;  %v630_v4 = vunpack.c.l.bf16 %v504_v60  ;;  %v559_v5 = vunpack.c.h.bf16 %v468_v59  ;;  %v1839_v40 = vld [vmem:[#allocation13 + $0x140] sm:$0xff] }
  0xe5   :  { %988 = vmatpush.msra.mxu1 %v373_v7  ;;  %1028 = vmatpush.msra.mxu3 %v374_v8  ;;  %v1829_v7 = vld [vmem:[#allocation13 + $0x170] sm:$0xff]  ;;  %v1831_v8 = vld [vmem:[#allocation13 + $0x248] sm:$0xff]  ;;  %v609_v59 = vunpack.c.h.bf16 %v1839_v40  ;;  %v663_v60 = vunpack.c.h.bf16 %v1841_v23 }
  0xe6   :  { %1044 = vmatpush.msrb.mxu0 %v612_v10  ;;  %1084 = vmatpush.msrb.mxu2 %v613_v11  ;;  %v624_v10 = vunpack.c.l.bf16 %v501_v2  ;;  %v462_v11 = vld [vmem:[#allocation13 + $0x48] sm:$0xff]  ;;  %v620_v16 = vunpack.c.l.bf16 %v1829_v7  ;;  %v621_v46 = vunpack.c.h.bf16 %v1829_v7  ;;  %v675_v47 = vunpack.c.h.bf16 %v1831_v8 }
  0xe7   :  { %989 = vmatpush.msra.mxu1 %v367_v13  ;;  %1029 = vmatpush.msra.mxu3 %v368_v14  ;;  %v625_v13 = vunpack.c.h.bf16 %v501_v2  ;;  %v1833_v14 = vld [vmem:[#allocation13 + $0x158] sm:$0xff]  ;;  %v597_v7 = vunpack.c.h.bf16 %v1853_v41 }
  0xe8   :  { %1045 = vmatpush.msrb.mxu0 %v606_v17  ;;  %1085 = vmatpush.msrb.mxu2 %v607_v18  ;;  %v674_v17 = vunpack.c.l.bf16 %v1831_v8  ;;  %v459_v18 = vld [vmem:[#allocation13 + $0x30] sm:$0xff]  ;;  %v615_v52 = vunpack.c.h.bf16 %v1833_v14  ;;  %v651_v8 = vunpack.c.h.bf16 %v1855_v42 }
  0xe9   :  { %990 = vmatpush.msra.mxu1 %v361_v21  ;;  %1030 = vmatpush.msra.mxu3 %v362_v22  ;;  %v546_v21 = vunpack.c.l.bf16 %v462_v11  ;;  %v547_v22 = vunpack.c.h.bf16 %v462_v11  ;;  %v541_v28 = vunpack.c.h.bf16 %v459_v18 }
  0xea   :  { %991 = vmatmul.f32.vlgmr.msra.gmra.mxu1 %v1813_v55  ;;  %1031 = vmatmul.f32.vlgmr.msra.gmra.mxu3 %v1813_v55  ;;  %v583_v55 = vunpack.c.h.bf16 %v480_v34 }
  0xeb   :  { %1046 = vmatpush.msrb.mxu0 %v600_v24  ;;  %1070 = vmatpush.msrb.mxu1 %v672_v25  ;;  %v614_v24 = vunpack.c.l.bf16 %v1833_v14  ;;  %v668_v25 = vunpack.c.l.bf16 %v1835_v15  ;;  %v1911_v15 = vld [vmem:[#allocation13 + $0x148] sm:$0xff] }
  0xec   :  { %1086 = vmatpush.msrb.mxu2 %v601_v26  ;;  %1110 = vmatpush.msrb.mxu3 %v673_v27  ;;  %v456_v26 = vld [vmem:[#allocation13 + $0x18] sm:$0xff]  ;;  %v540_v27 = vunpack.c.l.bf16 %v459_v18 }
  0xed   :  { %1047 = vmatpush.msrb.mxu0 %v594_v30  ;;  %1071 = vmatpush.msrb.mxu1 %v666_v31  ;;  %v1847_v30 = vld [vmem:[#allocation13 + $0x200] sm:$0xff]  ;;  %v608_v31 = vunpack.c.l.bf16 %v1839_v40  ;;  %v534_v34 = vunpack.c.l.bf16 %v456_v26  ;;  %v535_v35 = vunpack.c.h.bf16 %v456_v26  ;;  %v1919_v40 = vld [vmem:[#allocation13 + $0x130] sm:$0xff] }
  0xee   :  { %1087 = vmatpush.msrb.mxu2 %v595_v32  ;;  %1111 = vmatpush.msrb.mxu3 %v667_v33  ;;  %v662_v32 = vunpack.c.l.bf16 %v1841_v23  ;;  %v453_v33 = vld [vmem:[#allocation13] sm:$0xff]  ;;  %v657_v2 = vunpack.c.h.bf16 %v1847_v30  ;;  %v1921_v23 = vld [vmem:[#allocation13 + $0x50] sm:$0xff] }
  0xef   :  { %1048 = vmatpush.msrb.mxu0 %v588_v36  ;;  %1072 = vmatpush.msrb.mxu1 %v660_v37  ;;  %v602_v36 = vunpack.c.l.bf16 %v1845_v29  ;;  %v656_v37 = vunpack.c.l.bf16 %v1847_v30  ;;  %v548_v29 = vunpack.c.l.bf16 %v1921_v23  ;;  %v1929_v30 = vld [vmem:[#allocation13 + $0x118] sm:$0xff] }
  0xf0   :  { %1088 = vmatpush.msrb.mxu2 %v589_v38  ;;  %1112 = vmatpush.msrb.mxu3 %v661_v39  ;;  %v528_v38 = vunpack.c.l.bf16 %v453_v33  ;;  %v529_v39 = vunpack.c.h.bf16 %v453_v33 }
  0xf1   :  { %1049 = vmatpush.msrb.mxu0 %v582_v43  ;;  %1073 = vmatpush.msrb.mxu1 %v654_v44  ;;  %v1857_v43 = vld [vmem:[#allocation13 + $0xf8] sm:$0xff]  ;;  %v1859_v44 = vld [vmem:[#allocation13 + $0x1d0] sm:$0xff] }
  0xf2   :  { %1089 = vmatpush.msrb.mxu2 %v583_v55  ;;  %1113 = vmatpush.msrb.mxu3 %v655_v45  ;;  %v596_v55 = vunpack.c.l.bf16 %v1853_v41  ;;  %v650_v45 = vunpack.c.l.bf16 %v1855_v42  ;;  %v645_v14 = vunpack.c.h.bf16 %v1859_v44  ;;  %v1944_v42 = vld [vmem:[#allocation13 + $0xe8] sm:$0xff] }
  0xf3   :  { %1050 = vmatpush.msrb.mxu0 %v576_v48  ;;  %1074 = vmatpush.msrb.mxu1 %v648_v49  ;;  %v1865_v48 = vld [vmem:[#allocation13 + $0xe0] sm:$0xff]  ;;  %v1867_v49 = vld [vmem:[#allocation13 + $0x1b8] sm:$0xff] }
  0xf4   :  { %1090 = vmatpush.msrb.mxu2 %v577_v50  ;;  %1114 = vmatpush.msrb.mxu3 %v649_v51  ;;  %v590_v50 = vunpack.c.l.bf16 %v1857_v43  ;;  %v644_v51 = vunpack.c.l.bf16 %v1859_v44 }
  0xf5   :  { %1051 = vmatpush.msrb.mxu0 %v570_v54  ;;  %1075 = vmatpush.msrb.mxu1 %v642_v56  ;;  %v1879_v54 = vld [vmem:[#allocation13 + $0xc8] sm:$0xff]  ;;  %v1881_v56 = vld [vmem:[#allocation13 + $0x1a0] sm:$0xff] }
  0xf6   :  { %1091 = vmatpush.msrb.mxu2 %v571_v57  ;;  %1115 = vmatpush.msrb.mxu3 %v643_v58  ;;  %v584_v57 = vunpack.c.l.bf16 %v1865_v48  ;;  %v638_v58 = vunpack.c.l.bf16 %v1867_v49  ;;  %v579_v26 = vunpack.c.h.bf16 %v1879_v54 }
  0xf7   :  { %1052 = vmatpush.msrb.mxu0 %v564_v61  ;;  %1076 = vmatpush.msrb.mxu1 %v636_v62  ;;  %v1887_v61 = vld [vmem:[#allocation13 + $0xb0] sm:$0xff]  ;;  %v1889_v62 = vld [vmem:[#allocation13 + $0x188] sm:$0xff] }
  0xf8   :  { %1092 = vmatpush.msrb.mxu2 %v565_v63  ;;  %1116 = vmatpush.msrb.mxu3 %v637_v0  ;;  %v578_v63 = vunpack.c.l.bf16 %v1879_v54  ;;  %v632_v0 = vunpack.c.l.bf16 %v1881_v56  ;;  %v627_v33 = vunpack.c.h.bf16 %v1889_v62  ;;  %v1963_v54 = vld [vmem:[#allocation13 + $0x250] sm:$0xff] }
  0xf9   :  { %1053 = vmatpush.msrb.mxu0 %v558_v3  ;;  %1077 = vmatpush.msrb.mxu1 %v630_v4  ;;  %v1895_v3 = vld [vmem:[#allocation13 + $0x178] sm:$0xff] }
  0xfa   :  { %1093 = vmatpush.msrb.mxu2 %v559_v5  ;;  %1117 = vmatpush.msrb.mxu3 %v631_v6  ;;  %v1897_v4 = vld [vmem:[#allocation13 + $0x98] sm:$0xff]  ;;  %v572_v5 = vunpack.c.l.bf16 %v1887_v61  ;;  %v626_v6 = vunpack.c.l.bf16 %v1889_v62  ;;  %v622_v11 = vunpack.c.l.bf16 %v1895_v3  ;;  %v1974_v62 = vld [vmem:[#allocation13 + $0x88] sm:$0xff] }
  0xfb   :  { %1054 = vmatpush.msrb.mxu0 %v552_v9  ;;  %1078 = vmatpush.msrb.mxu1 %v624_v10  ;;  %v1903_v9 = vld [vmem:[#allocation13 + $0x160] sm:$0xff] }
  0xfc   :  { %1094 = vmatpush.msrb.mxu2 %v553_v12  ;;  %1118 = vmatpush.msrb.mxu3 %v625_v13  ;;  %v1905_v10 = vld [vmem:[#allocation13 + $0x80] sm:$0xff]  ;;  %v566_v12 = vunpack.c.l.bf16 %v1897_v4  ;;  %v591_v13 = vunpack.c.h.bf16 %v1857_v43  ;;  %v617_v41 = vunpack.c.h.bf16 %v1903_v9  ;;  %v1946_v43 = vld [vmem:[#allocation13 + $0x8] sm:$0xff] }
  0xfd   :  { %1123 = vmatpush.msra.mxu1 %v620_v16  ;;  %1055 = vmatpush.msrb.mxu0 %v546_v21  ;;  %v1913_v16 = vld [vmem:[#allocation13 + $0x68] sm:$0xff]  ;;  %v560_v18 = vunpack.c.l.bf16 %v1905_v10  ;;  %v585_v21 = vunpack.c.h.bf16 %v1865_v48  ;;  %v586_v48 = vunpack.c.l.bf16 %v1944_v42 }
  0xfe   :  { %1150 = vmatpush.msra.mxu3 %v674_v17  ;;  %1095 = vmatpush.msrb.mxu2 %v547_v22  ;;  %v616_v17 = vunpack.c.l.bf16 %v1903_v9  ;;  %v639_v22 = vunpack.c.h.bf16 %v1867_v49  ;;  %v530_v49 = vunpack.c.l.bf16 %v1946_v43  ;;  %v531_v9 = vunpack.c.h.bf16 %v1946_v43 }
  0xff   :  { %1124 = vmatpush.msra.mxu1 %v614_v24  ;;  %1056 = vmatpush.msrb.mxu0 %v540_v27  ;;  %v610_v24 = vunpack.c.l.bf16 %v1911_v15  ;;  %v633_v27 = vunpack.c.h.bf16 %v1881_v56  ;;  %v549_v56 = vunpack.c.h.bf16 %v1921_v23 }
 0x100   :  { %1151 = vmatpush.msra.mxu3 %v668_v25  ;;  %1096 = vmatpush.msrb.mxu2 %v541_v28  ;;  %v554_v25 = vunpack.c.l.bf16 %v1913_v16  ;;  %v604_v28 = vunpack.c.l.bf16 %v1919_v40 }
 0x101   :  { %1125 = vmatpush.msra.mxu1 %v608_v31  ;;  %1057 = vmatpush.msrb.mxu0 %v534_v34  ;;  %v1931_v31 = vld [vmem:[#allocation13 + $0x38] sm:$0xff]  ;;  %v623_v34 = vunpack.c.h.bf16 %v1895_v3 }
 0x102   :  { %1152 = vmatpush.msra.mxu3 %v662_v32  ;;  %1097 = vmatpush.msrb.mxu2 %v535_v35  ;;  %v573_v32 = vunpack.c.h.bf16 %v1887_v61  ;;  %v1936_v35 = vld [vmem:[#allocation13 + $0x100] sm:$0xff]  ;;  %v543_v61 = vunpack.c.h.bf16 %v1931_v31 }
 0x103   :  { %1126 = vmatpush.msra.mxu1 %v602_v36  ;;  %1058 = vmatpush.msrb.mxu0 %v528_v38  ;;  %v1938_v36 = vld [vmem:[#allocation13 + $0x20] sm:$0xff]  ;;  %v542_v38 = vunpack.c.l.bf16 %v1931_v31  ;;  %v592_v44 = vunpack.c.l.bf16 %v1936_v35 }
 0x104   :  { %1153 = vmatpush.msra.mxu3 %v656_v37  ;;  %1098 = vmatpush.msrb.mxu2 %v529_v39  ;;  %v598_v37 = vunpack.c.l.bf16 %v1929_v30  ;;  %v567_v39 = vunpack.c.h.bf16 %v1897_v4  ;;  %v537_v3 = vunpack.c.h.bf16 %v1938_v36  ;;  %v1984_v4 = vld [vmem:[#allocation13 + $0x70] sm:$0xff] }
 0x105   :  { %1059 = vmatmul.f32.vlgmr.msrb.gmra.mxu0 %v1823_v19  ;;  %1438 = vmatmul.msk.f32.vlgmr.msrb.gmra.mxu1 %vm1040_vm5, %v1825_v20 }
 0x106   :  { %1099 = vmatmul.f32.vlgmr.msrb.gmra.mxu2 %v1823_v19  ;;  %1439 = vmatmul.msk.f32.vlgmr.msrb.gmra.mxu3 %vm1040_vm5, %v1825_v20 }
 0x107   :  { %1127 = vmatpush.msra.mxu1 %v596_v55  ;;  %1154 = vmatpush.msra.mxu3 %v650_v45  ;;  %v536_v55 = vunpack.c.l.bf16 %v1938_v36  ;;  %v561_v45 = vunpack.c.h.bf16 %v1905_v10  ;;  %v1990_v10 = vld [vmem:[#allocation13 + $0x58] sm:$0xff] }
 0x108   :  { %1163 = vmatpush.msra.mxu0 %v621_v46  ;;  %1190 = vmatpush.msra.mxu2 %v675_v47  ;;  %v611_v46 = vunpack.c.h.bf16 %v1911_v15  ;;  %v1954_v47 = vld [vmem:[#allocation13 + $0xd0] sm:$0xff]  ;;  %v461_v15 = vld [vmem:[#allocation13 + $0x40] sm:$0xff] }
 0x109   :  { %1128 = vmatpush.msra.mxu1 %v590_v50  ;;  %1155 = vmatpush.msra.mxu3 %v644_v51  ;;  %v555_v50 = vunpack.c.h.bf16 %v1913_v16  ;;  %v1959_v51 = vld [vmem:[#allocation13 + $0xb8] sm:$0xff] }
 0x10a   :  { %1164 = vmatpush.msra.mxu0 %v615_v52  ;;  %1191 = vmatpush.msra.mxu2 %v669_v53  ;;  %v580_v52 = vunpack.c.l.bf16 %v1954_v47  ;;  %v605_v53 = vunpack.c.h.bf16 %v1919_v40  ;;  %v458_v40 = vld [vmem:[#allocation13 + $0x28] sm:$0xff] }
 0x10b   :  { %1129 = vmatpush.msra.mxu1 %v584_v57  ;;  %1156 = vmatpush.msra.mxu3 %v638_v58  ;;  %v1966_v57 = vld [vmem:[#allocation13 + $0xa0] sm:$0xff]  ;;  %v574_v58 = vunpack.c.l.bf16 %v1959_v51 }
 0x10c   :  { %1165 = vmatpush.msra.mxu0 %v609_v59  ;;  %1192 = vmatpush.msra.mxu2 %v663_v60  ;;  %v599_v59 = vunpack.c.h.bf16 %v1929_v30  ;;  %v1970_v60 = vld [vmem:[#allocation13 + $0x238] sm:$0xff]  ;;  %v538_v30 = vunpack.c.l.bf16 %v458_v40 }
 0x10d   :  { %1130 = vmatpush.msra.mxu1 %v578_v63  ;;  %1157 = vmatpush.msra.mxu3 %v632_v0  ;;  %v676_v63 = vunpack.c.l.bf16 %v1963_v54  ;;  %v568_v0 = vunpack.c.l.bf16 %v1966_v57 }
 0x10e   :  { %1166 = vmatpush.msra.mxu0 %v603_v1  ;;  %1193 = vmatpush.msra.mxu2 %v657_v2  ;;  %v593_v1 = vunpack.c.h.bf16 %v1936_v35  ;;  %v1979_v2 = vld [vmem:[#allocation13 + $0x220] sm:$0xff] }
 0x10f   :  { %1131 = vmatpush.msra.mxu1 %v572_v5  ;;  %1158 = vmatpush.msra.mxu3 %v626_v6  ;;  %v670_v5 = vunpack.c.l.bf16 %v1970_v60  ;;  %v562_v6 = vunpack.c.l.bf16 %v1974_v62  ;;  %v665_v31 = vunpack.c.h.bf16 %v1979_v2 }
 0x110   :  { %1167 = vmatpush.msra.mxu0 %v597_v7  ;;  %1194 = vmatpush.msra.mxu2 %v651_v8  ;;  %v587_v7 = vunpack.c.h.bf16 %v1944_v42  ;;  %v518_v8 = vld [vmem:[#allocation13 + $0x208] sm:$0xff]  ;;  %v551_v42 = vunpack.c.h.bf16 %v1990_v10 }
 0x111   :  { %1203 = vmatpush.msrb.mxu3 %v622_v11  ;;  %1132 = vmatpush.msra.mxu1 %v566_v12  ;;  %v664_v11 = vunpack.c.l.bf16 %v1979_v2  ;;  %v556_v12 = vunpack.c.l.bf16 %v1984_v4  ;;  %v658_v16 = vunpack.c.l.bf16 %v518_v8  ;;  %v659_v36 = vunpack.c.h.bf16 %v518_v8  ;;  %v2019_v2 = vld [vmem:[#allocation14] sm:$0xff] }
 0x112   :  { %1168 = vmatpush.msra.mxu0 %v591_v13  ;;  %1195 = vmatpush.msra.mxu2 %v645_v14  ;;  %v515_v13 = vld [vmem:[#allocation13 + $0x1f0] sm:$0xff]  ;;  %v581_v14 = vunpack.c.h.bf16 %v1954_v47 }
 0x113   :  { %1204 = vmatpush.msrb.mxu3 %v616_v17  ;;  %1133 = vmatpush.msra.mxu1 %v560_v18  ;;  %v550_v17 = vunpack.c.l.bf16 %v1990_v10  ;;  %v677_v18 = vunpack.c.h.bf16 %v1963_v54  ;;  %v652_v23 = vunpack.c.l.bf16 %v515_v13 }
 0x114   :  { %1169 = vmatpush.msra.mxu0 %v585_v21  ;;  %1196 = vmatpush.msra.mxu2 %v639_v22  ;;  %v512_v21 = vld [vmem:[#allocation13 + $0x1d8] sm:$0xff]  ;;  %v575_v22 = vunpack.c.h.bf16 %v1959_v51 }
 0x115   :  { %1205 = vmatpush.msrb.mxu3 %v610_v24  ;;  %1134 = vmatpush.msra.mxu1 %v554_v25  ;;  %v544_v24 = vunpack.c.l.bf16 %v461_v15  ;;  %v671_v25 = vunpack.c.h.bf16 %v1970_v60 }
 0x116   :  { %1170 = vmatpush.msra.mxu0 %v579_v26  ;;  %1197 = vmatpush.msra.mxu2 %v633_v27  ;;  %v509_v26 = vld [vmem:[#allocation13 + $0x1c0] sm:$0xff]  ;;  %v569_v27 = vunpack.c.h.bf16 %v1966_v57 }
 0x117   :  { %1206 = vmatpush.msrb.mxu3 %v604_v28  ;;  %1135 = vmatpush.msra.mxu1 %v548_v29  ;;  %v455_v28 = vld [vmem:[#allocation13 + $0x10] sm:$0xff]  ;;  %v646_v29 = vunpack.c.l.bf16 %v512_v21 }
 0x118   :  { %1171 = vmatpush.msra.mxu0 %v573_v32  ;;  %1198 = vmatpush.msra.mxu2 %v627_v33  ;;  %v563_v32 = vunpack.c.h.bf16 %v1974_v62  ;;  %v640_v33 = vunpack.c.l.bf16 %v509_v26  ;;  %v532_v35 = vunpack.c.l.bf16 %v455_v28 }
 0x119   :  { %1440 = vmatmul.msk.f32.vlgmr.msra.gmra.mxu3 %vm1040_vm5, %v1825_v20  ;;  %1136 = vmatpush.msra.mxu1 %v542_v38  ;;  %v503_v38 = vld [vmem:[#allocation13 + $0x190] sm:$0xff] }
 0x11a   :  { %1243 = vmatpush.msrb.mxu2 %v623_v34  ;;  %1207 = vmatpush.msrb.mxu3 %v598_v37  ;;  %v506_v34 = vld [vmem:[#allocation13 + $0x1a8] sm:$0xff]  ;;  %v557_v37 = vunpack.c.h.bf16 %v1984_v4  ;;  %v628_v43 = vunpack.c.l.bf16 %v503_v38 }
 0x11b   :  { %1172 = vmatpush.msra.mxu0 %v567_v39  ;;  %1137 = vmatpush.msra.mxu1 %v536_v55  ;;  %v634_v39 = vunpack.c.l.bf16 %v506_v34  ;;  %v545_v55 = vunpack.c.h.bf16 %v461_v15  ;;  %v635_v47 = vunpack.c.h.bf16 %v506_v34 }
 0x11c   :  { %1244 = vmatpush.msrb.mxu2 %v617_v41  ;;  %1208 = vmatpush.msrb.mxu3 %v592_v44  ;;  %v653_v41 = vunpack.c.h.bf16 %v515_v13  ;;  %v647_v44 = vunpack.c.h.bf16 %v512_v21 }
 0x11d   :  { %1173 = vmatpush.msra.mxu0 %v561_v45  ;;  %1138 = vmatpush.msra.mxu1 %v530_v49  ;;  %v641_v45 = vunpack.c.h.bf16 %v509_v26  ;;  %v629_v49 = vunpack.c.h.bf16 %v503_v38 }
 0x11e   :  { %1245 = vmatpush.msrb.mxu2 %v611_v46  ;;  %1209 = vmatpush.msrb.mxu3 %v586_v48  ;;  %v539_v46 = vunpack.c.h.bf16 %v458_v40  ;;  %v533_v48 = vunpack.c.h.bf16 %v455_v28 }
 0x11f   :  { %1174 = vmatpush.msra.mxu0 %v555_v50  ;;  %1139 = vmatmul.f32.vlgmr.msra.gmra.mxu1 %v1823_v19 }
 0x120   :  { %1210 = vmatpush.msrb.mxu3 %v580_v52  ;;  %1246 = vmatpush.msrb.mxu2 %v605_v53 }
 0x121   :  { %1175 = vmatpush.msra.mxu0 %v549_v56  ;;  %1441 = vmatmul.msk.f32.vlgmr.msra.gmra.mxu2 %vm1040_vm5, %v1825_v20 }
 0x122   :  { %1211 = vmatpush.msrb.mxu3 %v574_v58  ;;  %1247 = vmatpush.msrb.mxu2 %v599_v59 }
 0x123   :  { %1176 = vmatpush.msra.mxu0 %v543_v61  ;;  %1230 = vmatpush.msrb.mxu1 %v676_v63 }
 0x124   :  { %1212 = vmatpush.msrb.mxu3 %v568_v0  ;;  %1248 = vmatpush.msrb.mxu2 %v593_v1 }
 0x125   :  { %1177 = vmatpush.msra.mxu0 %v537_v3  ;;  %1231 = vmatpush.msrb.mxu1 %v670_v5  ;;  %v1285_v3 = vperm.slane %v2019_v2, 1 }
 0x126   :  { %1213 = vmatpush.msrb.mxu3 %v562_v6  ;;  %1249 = vmatpush.msrb.mxu2 %v587_v7 }
 0x127   :  { %1178 = vmatpush.msra.mxu0 %v531_v9  ;;  %1232 = vmatpush.msrb.mxu1 %v664_v11  ;;  %v2022_v9 = vld [vmem:[#allocation14 + $0x8] sm:$0xff] }
 0x128   :  { %1179 = vmatmul.f32.vlgmr.msra.gmra.mxu0 %v1823_v19  ;;  %1214 = vmatpush.msrb.mxu3 %v556_v12  ;;  %v1286_v10 = vperm.slane %v2022_v9, 1 }
 0x129   :  { %1250 = vmatpush.msrb.mxu2 %v581_v14  ;;  %1233 = vmatpush.msrb.mxu1 %v658_v16 }
 0x12a   :  { %1215 = vmatpush.msrb.mxu3 %v550_v17  ;;  %1270 = vmatpush.msrb.mxu0 %v677_v18 }
 0x12b   :  { %1251 = vmatpush.msrb.mxu2 %v575_v22  ;;  %1234 = vmatpush.msrb.mxu1 %v652_v23  ;;  %v1329_v23 = vperm.slane %v2019_v2, 2 }
 0x12c   :  { %1216 = vmatpush.msrb.mxu3 %v544_v24  ;;  %1271 = vmatpush.msrb.mxu0 %v671_v25 }
 0x12d   :  { %1252 = vmatpush.msrb.mxu2 %v569_v27  ;;  %1235 = vmatpush.msrb.mxu1 %v646_v29 }
 0x12e   :  { %1217 = vmatpush.msrb.mxu3 %v538_v30  ;;  %1272 = vmatpush.msrb.mxu0 %v665_v31 }
 0x12f   :  { %1253 = vmatpush.msrb.mxu2 %v563_v32  ;;  %1236 = vmatpush.msrb.mxu1 %v640_v33  ;;  %v1330_v33 = vperm.slane %v2022_v9, 2 }
 0x130   :  { %1218 = vmatpush.msrb.mxu3 %v532_v35  ;;  %1273 = vmatpush.msrb.mxu0 %v659_v36 }
 0x131   :  { %1254 = vmatpush.msrb.mxu2 %v557_v37  ;;  %1219 = vmatmul.f32.vlgmr.msrb.gmra.mxu3 %v1823_v19 }
 0x132   :  { %1237 = vmatpush.msrb.mxu1 %v634_v39  ;;  %1274 = vmatpush.msrb.mxu0 %v653_v41 }
 0x133   :  { %1255 = vmatpush.msrb.mxu2 %v551_v42 }
 0x134   :  { %1238 = vmatpush.msrb.mxu1 %v628_v43  ;;  %1275 = vmatpush.msrb.mxu0 %v647_v44 }
 0x135   :  { %1256 = vmatpush.msrb.mxu2 %v545_v55  ;;  %1442 = vmatmul.msk.f32.vlgmr.msrb.gmra.mxu1 %vm1040_vm5, %v1825_v20 }
 0x136   :  { %1276 = vmatpush.msrb.mxu0 %v641_v45 }
 0x137   :  { %1257 = vmatpush.msrb.mxu2 %v539_v46 }
 0x138   :  { %1277 = vmatpush.msrb.mxu0 %v635_v47 }
 0x139   :  { %1258 = vmatpush.msrb.mxu2 %v533_v48 }
 0x13a   :  { %1259 = vmatmul.f32.vlgmr.msrb.gmra.mxu2 %v1823_v19  ;;  %1278 = vmatpush.msrb.mxu0 %v629_v49  ;;  %v1375_v49 = vperm.slane %v2019_v2, 4 }
 0x13b   :  { %1443 = vmatmul.msk.f32.vlgmr.msrb.gmra.mxu0 %vm1040_vm5, %v1825_v20 }
 0x13d   :  { %v812_v50 = vpop.f32.mrf.mxu0 }
 0x143   :  { %v832_v51 = vpop.f32.mrf.mxu1  ;;  %v852_v52 = vpop.f32.mrf.mxu2 }
 0x144   :  { %v833_v20 = vadd.f32 %v832_v51, %v812_v50 }
 0x146   :  { %v892_v54 = vpop.f32.mrf.mxu0 }
 0x149   :  { %v872_v53 = vpop.f32.mrf.mxu3 }
 0x14a   :  { %v873_v6 = vadd.f32 %v872_v53, %v852_v52 }
 0x14c   :  { %v932_v57 = vpop.f32.mrf.mxu2 }
 0x14d   :  { %v912_v56 = vpop.f32.mrf.mxu1 }
 0x14e   :  { %v913_v22 = vadd.f32 %v912_v56, %v892_v54 }
 0x153   :  { %v952_v58 = vpop.f32.mrf.mxu3 }
 0x154   :  { %v953_v31 = vadd.f32 %v952_v58, %v932_v57 }
 0x160   :  { %v2011_v59 = vpop.f32.mrf.mxu0 }
 0x166   :  { %v2015_v61 = vpop.f32.mrf.mxu2 }
 0x167   :  { %v2013_v60 = vpop.f32.mrf.mxu1 }
 0x16d   :  { %v2017_v62 = vpop.f32.mrf.mxu3 }
 0x182   :  { %v1060_v19 = vpop.f32.mrf.mxu0  ;;  %v1080_v63 = vpop.f32.mrf.mxu1 }
 0x183   :  { %v1081_v0 = vadd.f32 %v1080_v63, %v1060_v19  ;;  %v1371_v63 = vperm.slane %v2019_v2, 3 }
 0x185   :  { %v1283_v1 = vadd.f32 %v1081_v0, %v833_v20 }
 0x187   :  { %v1287_v7 = vadd.f32 %v1285_v3, %v1283_v1  ;;  %v993_v1 = vadd.f32 %v2013_v60, %v2011_v59 }
 0x189   :  { %v1100_v4 = vpop.f32.mrf.mxu2  ;;  %v1120_v5 = vpop.f32.mrf.mxu3  ;;  %v1444_v12 = vmul.f32 -1.442695, %v1287_v7 }
 0x18a   :  { %v1121_v8 = vadd.f32 %v1120_v5, %v1100_v4  ;;  %v1033_v4 = vadd.f32 %v2017_v62, %v2015_v61  ;;  %v1372_v5 = vperm.slane %v2022_v9, 3 }
 0x18b   :  { %1465 = vpow2.f32 %v1444_v12 }
 0x18c   :  { %v1284_v11 = vadd.f32 %v1121_v8, %v873_v6 }
 0x18e   :  { %v1288_v13 = vadd.f32 %v1286_v10, %v1284_v11  ;;  %v1376_v11 = vperm.slane %v2022_v9, 4 }
 0x190   :  { %v1445_v14 = vmul.f32 -1.442695, %v1288_v13  ;;  %v1373_v13 = vadd.f32 %v1371_v63, %v993_v1 }
 0x191   :  { %v1466_v15 = vpop.eup %1465 }
 0x192   :  { %1467 = vpow2.f32 %v1445_v14  ;;  %v1295_v16 = vadd.f32 1.0, %v1466_v15 }
 0x194   :  { %1469 = vrcp.f32 %v1295_v16  ;;  %v1308_v53 = vand.u32 2147483648, %v1295_v16  ;;  %vm1302_vm7 = vweird.f32 %v1295_v16  ;;  %v1306_v56 = vand.u32 2147483647, %v1295_v16 }
 0x196   :  { %v1309_v20 = vor.u32 1.1754944e-38, %v1308_v53  ;;  %vm1307_vm9 = vcmp.eq.f32.partialorder %v1306_v56, 8.507059e+37 }
 0x198   :  { %v1468_v21 = vpop.eup %1467 }
 0x199   :  { %v2026_v25 = vadd.f32 1.0, %v1468_v21 }
 0x19a   :  { %v1470_v29 = vpop.eup %1469 }
 0x19b   :  { %1471 = vrcp.f32 %v2026_v25  ;;  %v1298_v35 = vmul.f32 %v1470_v29, %v1295_v16  ;;  %vm1303_vm6 = vweird.f32 %v1470_v29  ;;  %v1323_v8 = vand.u32 2147483648, %v2026_v25 }
 0x19c   :  { %v1140_v17 = vpop.f32.mrf.mxu1  ;;  %v1160_v18 = vpop.f32.mrf.mxu3  ;;  %vm1304_vm8 = vmor %vm1302_vm7, %vm1303_vm6  ;;  %vm1317_vm11 = vweird.f32 %v2026_v25  ;;  %v1321_v2 = vand.u32 2147483647, %v2026_v25  ;;  %v1374_v16 = vadd.f32 %v1372_v5, %v1033_v4  ;;  %vm1401_vm6 = vcmask 1041408  }
 0x19d   :  { %v1161_v40 = vadd.f32 %v1160_v18, %v1140_v17  ;;  %v1299_v42 = vsub.f32 1.0, %v1298_v35  ;;  %v1324_v15 = vor.u32 1.1754944e-38, %v1323_v8  ;;  %vm1404_vm7 = vcmask 584706  }
 0x19e   :  { %vm1322_vm13 = vcmp.eq.f32.partialorder %v1321_v2, 8.507059e+37 }
 0x19f   :  { %v1327_v24 = vadd.f32 %v1161_v40, %v913_v22  ;;  %v1300_v44 = vmul.f32 %v1470_v29, %v1299_v42  ;;  %v1390_v42 = vld.sshfl [vmem:[#allocation1] sm:$0xff pattern:$0x73625140] }
 0x1a1   :  { %v1331_v26 = vadd.f32 %v1329_v23, %v1327_v24  ;;  %v1472_v36 = vpop.eup %1471  ;;  %v1301_v48 = vadd.f32 %v1470_v29, %v1300_v44 }
 0x1a2   :  { %v1313_v43 = vmul.f32 %v1472_v36, %v2026_v25  ;;  %vm1318_vm10 = vweird.f32 %v1472_v36 }
 0x1a3   :  { %v1446_v27 = vmul.f32 -1.442695, %v1331_v26  ;;  %v1305_v58 = vsel %vm1304_vm8, %v1470_v29, %v1301_v48  ;;  %vm1319_vm12 = vmor %vm1317_vm11, %vm1318_vm10 }
 0x1a4   :  { %v1200_v28 = vpop.f32.mrf.mxu2  ;;  %v1314_v45 = vsub.f32 1.0, %v1313_v43  ;;  %v1310_v6 = vsel %vm1307_vm9, %v1309_v20, %v1305_v58  ;;  %vm1405_vm8 = vmor %vm1404_vm7, %vm1401_vm6 }
 0x1a5   :  { %1473 = vpow2.f32 %v1446_v27  ;;  %v1180_v30 = vpop.f32.mrf.mxu0 }
 0x1a6   :  { %v1201_v32 = vadd.f32 %v1200_v28, %v1180_v30  ;;  %v1315_v57 = vmul.f32 %v1472_v36, %v1314_v45 }
 0x1a8   :  { %v1328_v34 = vadd.f32 %v1201_v32, %v953_v31  ;;  %v1316_v3 = vadd.f32 %v1472_v36, %v1315_v57 }
 0x1aa   :  { %v1332_v37 = vadd.f32 %v1330_v33, %v1328_v34  ;;  %v1320_v62 = vsel %vm1319_vm12, %v1472_v36, %v1316_v3 }
 0x1ab   :  { %v1474_v38 = vpop.eup %1473  ;;  %v1325_v22 = vsel %vm1322_vm13, %v1324_v15, %v1320_v62 }
 0x1ac   :  { %v2030_v39 = vadd.f32 1.0, %v1474_v38  ;;  %v1447_v41 = vmul.f32 -1.442695, %v1332_v37  ;;  %v1391_v37 = vld.sshfl [vmem:[#allocation1 + $0x8] sm:$0xff pattern:$0x73625140] }
 0x1ae   :  { %1475 = vrcp.f32 %v2030_v39  ;;  %vm1346_vm15 = vweird.f32 %v2030_v39  ;;  %v1352_v23 = vand.u32 2147483648, %v2030_v39  ;;  %v1350_v26 = vand.u32 2147483647, %v2030_v39 }
 0x1af   :  { %1477 = vpow2.f32 %v1447_v41 }
 0x1b0   :  { %v1353_v31 = vor.u32 1.1754944e-38, %v1352_v23  ;;  %vm1351_vm4 = vcmp.eq.f32.partialorder %v1350_v26, 8.507059e+37 }
 0x1b2   :  { %v1240_v55 = vpop.f32.mrf.mxu1 }
 0x1b4   :  { %v2034_v46 = vpop.eup %1475  ;;  %v1220_v47 = vpop.f32.mrf.mxu3 }
 0x1b5   :  { %v1478_v50 = vpop.eup %1477  ;;  %v1342_v51 = vmul.f32 %v2034_v46, %v2030_v39  ;;  %v1241_v52 = vadd.f32 %v1240_v55, %v1220_v47  ;;  %vm1347_vm14 = vweird.f32 %v2034_v46 }
 0x1b6   :  { %v1340_v54 = vadd.f32 1.0, %v1478_v50  ;;  %vm1348_vm1 = vmor %vm1346_vm15, %vm1347_vm14 }
 0x1b7   :  { %v1377_v19 = vadd.f32 %v1375_v49, %v1241_v52  ;;  %v1343_v0 = vsub.f32 1.0, %v1342_v51 }
 0x1b8   :  { %1479 = vrcp.f32 %v1340_v54  ;;  %v1280_v7 = vpop.f32.mrf.mxu0  ;;  %v1367_v24 = vand.u32 2147483648, %v1340_v54  ;;  %v1365_v27 = vand.u32 2147483647, %v1340_v54  ;;  %vm1361_vm2 = vweird.f32 %v1340_v54 }
 0x1b9   :  { %v1379_v10 = vmul.f32 %v1377_v19, %v1310_v6  ;;  %v1344_v60 = vmul.f32 %v2034_v46, %v1343_v0 }
 0x1ba   :  { %v1368_v32 = vor.u32 1.1754944e-38, %v1367_v24  ;;  %vm1366_vm5 = vcmp.eq.f32.partialorder %v1365_v27, 8.507059e+37 }
 0x1bb   :  { %v1381_v17 = vadd.f32 %v1379_v10, %v1373_v13  ;;  %v1345_v40 = vadd.f32 %v2034_v46, %v1344_v60 }
 0x1bd   :  { %v1260_v59 = vpop.f32.mrf.mxu2  ;;  %1481 = vtanh.f32 %v1381_v17  ;;  %v1349_v29 = vsel %vm1348_vm1, %v2034_v46, %v1345_v40 }
 0x1be   :  { %v1480_v12 = vpop.eup %1479  ;;  %v1281_v61 = vadd.f32 %v1280_v7, %v1260_v59  ;;  %v1354_v34 = vsel %vm1351_vm4, %v1353_v31, %v1349_v29 }
 0x1bf   :  { %v1357_v14 = vmul.f32 %v1480_v12, %v1340_v54  ;;  %vm1362_vm0 = vweird.f32 %v1480_v12  ;;  %v1385_v38 = vsub.f32 1.0, %v1354_v34  ;;  %v1394_v45 = vmul.f32 %v1390_v42, %v1354_v34 }
 0x1c0   :  { %v1378_v18 = vadd.f32 %v1376_v11, %v1281_v61  ;;  %vm1363_vm3 = vmor %vm1361_vm2, %vm1362_vm0 }
 0x1c1   :  { %v1358_v21 = vsub.f32 1.0, %v1357_v14 }
 0x1c2   :  { %v1380_v9 = vmul.f32 %v1378_v18, %v1325_v22 }
 0x1c3   :  { %v1359_v25 = vmul.f32 %v1480_v12, %v1358_v21  ;;  %v1482_v36 = vpop.eup %1481 }
 0x1c4   :  { %v1382_v28 = vadd.f32 %v1380_v9, %v1374_v16  ;;  %v1387_v43 = vmul.f32 %v1482_v36, %v1385_v38 }
 0x1c5   :  { %v1360_v30 = vadd.f32 %v1480_v12, %v1359_v25 }
 0x1c6   :  { %1483 = vtanh.f32 %v1382_v28  ;;  %v1396_v47 = vadd.f32 %v1394_v45, %v1387_v43 }
 0x1c7   :  { %v1364_v33 = vsel %vm1363_vm3, %v1480_v12, %v1360_v30 }
 0x1c8   :  { %v1369_v35 = vsel %vm1366_vm5, %v1368_v32, %v1364_v33 }
 0x1c9   :  { %v1386_v39 = vsub.f32 1.0, %v1369_v35  ;;  %v1395_v55 = vmul.f32 %v1391_v37, %v1369_v35 }
 0x1cc   :  { %v1484_v41 = vpop.eup %1483 }
 0x1cd   :  { %v1388_v44 = vmul.f32 %v1484_v41, %v1386_v39 }
 0x1cf   :  { %v1397_v46 = vadd.f32 %v1395_v55, %v1388_v44 }
 0x1d1   :  { %v1400_v48 = vrot.slane %v1397_v46, 6 }
 0x1d3   :  { %v1402_v49 = vsel %vm1401_vm6, %v1396_v47, %v1400_v48 }
 0x1d4   :  { %1406 = vst.msk [vmem:[#allocation16] sm:$0xf] %vm1405_vm8, %v1402_v49 }
 0x1d5   :  { %1417 = dma.vmem_to_hbm [thread:$0]  %s1413_s7, 64, %s1415_s22, [#allocation4]  }
 0x1d6   :  { %1713 = dma.done.wait [#allocation4], 64  }
 0x1d7   :  { %1714 = vsyncadd [#allocation4], 4294967232 }
 0x1d8   :  { %1422 = vsyncpa [#allocation3], 1 }
 0x1d9   :  { %1423 = vsyncpa [#allocation6], 1 }
 0x1da   :  { %1424 = vsyncpa [#allocation9], 1 }
 0x1db   :  { %1425 = vsyncpa [#allocation12], 1 }
 0x1dc   :  { %1426 = vsyncpa [#allocation15], 1 }
 0x1dd   :  { %1427 = vsyncpa [#allocation4], 1 }

</bundles_post_ra>
